<compile_context>
chip_gen: v7x
topology: tpu7x:2x2x1
jax: 0.10.0
libtpu: 0.0.40
codegen_flags: <defaults>
</compile_context>

<pallas_src>
import functools

import jax
import jax.numpy as jnp
import numpy as np
from jax.experimental import pallas as pl
from jax.experimental.pallas import tpu as pltpu

EPS = 1e-5  # nn.InstanceNorm2d default


def _residual_block_kernel(xp_ref, hmask_ref, w1_ref, g1_ref, b1_ref,
                           w2_ref, g2_ref, b2_ref, out_ref, yp_ref,
                           *, H, W, images_per_step, mxu_dtype):
    HW = H * W
    Lp = (H + 2) * W              # halo-padded image length (1 zero row top/bot)
    inv_hw = 1.0 / HW
    C = yp_ref.shape[0]

    def conv3x3(tap_src, w_ref):
        """3x3 'same' conv as 9 tap-accumulated MXU matmuls (no im2col stack).

        tap_src(dy) -> (C_in, HW) activation for vertical tap dy; halo rows are
        real zeros so vertical taps need no masks.  Horizontal +/-1 taps are
        realized by rolling the per-dx partial results (shift commutes with the
        channel contraction): 2 XLU rolls + 2 column masks per conv.
        """
        q = [None, None, None]                      # partial sums per dx
        for dy in range(3):
            xv = tap_src(dy)
            for dx in range(3):
                # TODO(synk): at production C (>=128) pad C_out to the MXU width
                # (128 v5e / 256 v6e+) or reorient to (HW, C_in) @ (C_in, C_out)
                # so the streamed M dimension fills the systolic array.
                c = jnp.dot(w_ref[dy * 3 + dx], xv,
                            preferred_element_type=jnp.float32)
                q[dx] = c if q[dx] is None else q[dx] + c
        left = pltpu.roll(q[0], shift=1, axis=1) * hmask_ref[0:1, :]
        right = pltpu.roll(q[2], shift=HW - 1, axis=1) * hmask_ref[1:2, :]
        return q[1] + left + right                  # (C_out, HW) f32

    def instance_norm(acc, g_ref, b_ref):
        # Two-pass stats (mean, then E[(x-mean)^2]) to avoid the E[x^2]-m^2
        # cancellation flagged in review; gamma folded into the rsqrt scale.
        m = jnp.sum(acc, axis=1, keepdims=True) * inv_hw
        xc = acc - m
        v = jnp.sum(xc * xc, axis=1, keepdims=True) * inv_hw
        return xc * (g_ref[...] * jax.lax.rsqrt(v + EPS)) + b_ref[...]

    # Zero the halo rows of the conv2 scratch every step (cannot gate on
    # program_id==0: under megacore each core owns a private scratch and its
    # first step may not be step 0).  The interior is overwritten per image.
    yp_ref[:, 0:W] = jnp.zeros((C, W), yp_ref.dtype)
    yp_ref[:, W + HW:Lp] = jnp.zeros((C, W), yp_ref.dtype)

    for b in range(images_per_step):
        xpad = xp_ref[b]                             # (C, Lp) f32, halo rows = 0
        x = xpad[:, W:W + HW]                        # un-padded tile (residual input)

        # ---- conv1: taps sliced straight out of the halo-padded input ----
        acc1 = conv3x3(
            lambda dy: xpad[:, dy * W:dy * W + HW].astype(mxu_dtype), w1_ref)
        # ---- InstanceNorm1 + ReLU ----
        y = jnp.maximum(instance_norm(acc1, g1_ref, b1_ref), 0.0)

        # ---- conv2: taps sliced from a halo-padded VMEM copy of y ----
        yp_ref[:, W:W + HW] = y.astype(yp_ref.dtype)
        acc2 = conv3x3(lambda dy: yp_ref[:, dy * W:dy * W + HW], w2_ref)
        # ---- InstanceNorm2 + residual add, lane-dense store ----
        z = instance_norm(acc2, g2_ref, b2_ref)
        out_ref[b] = (x + z).astype(out_ref.dtype)


def residual_block(x, w1, g1, b1, w2, g2, b2, *,
                   mxu_dtype=jnp.float32, images_per_step=1):
    """x: (N, C, H, W); conv weights (C, C, 3, 3) OIHW (bias-free); affine (C,)."""
    N, C, H, W = x.shape
    HW = H * W
    Lp = (H + 2) * W
    assert N % images_per_step == 0

    # 1-row zero halo top & bottom -> vertical conv taps become plain lane slices.
    # TODO(synk): at production H*W, tile HW into W-aligned row bands (halo rows
    # fetched from the neighbouring band) instead of whole images, and widen the
    # matmul RHS across images_per_step*HW for small images.
    xp = jnp.pad(x.astype(jnp.float32), ((0, 0), (0, 0), (1, 1), (0, 0)))
    xp = xp.reshape(N, C, Lp)

    # (C_out, C_in, 3, 3) -> (9, C_out, C_in), tap index k = dy*3 + dx.
    def tap_w(w):
        return jnp.transpose(w, (2, 3, 0, 1)).reshape(9, C, C).astype(mxu_dtype)

    w1t, w2t = tap_w(w1), tap_w(w2)
    g1r = g1.reshape(C, 1).astype(jnp.float32)
    b1r = b1.reshape(C, 1).astype(jnp.float32)
    g2r = g2.reshape(C, 1).astype(jnp.float32)
    b2r = b2.reshape(C, 1).astype(jnp.float32)

    # Column-validity masks for the rolled horizontal partials:
    # row 0 zeroes column 0 (left-neighbour tap), row 1 zeroes column W-1.
    col = np.arange(W, dtype=np.float32)
    hmask = jnp.asarray(np.stack([np.tile((col > 0).astype(np.float32), H),
                                  np.tile((col < W - 1).astype(np.float32), H)]))

    kernel = functools.partial(_residual_block_kernel, H=H, W=W,
                               images_per_step=images_per_step,
                               mxu_dtype=mxu_dtype)

    # Explicit VMEM budget (v7x: 64 MiB physical): double-buffered in/out blocks
    # + constant operands (worst case 2 buffers each) + halo scratch + live f32
    # temporaries (q0..q2, acc, y, z), with 2x margin, clamped to [16, 48] MiB.
    est = 4 * (2 * images_per_step * C * (Lp + HW)
               + 2 * (2 * HW + 18 * C * C + 4 * C)
               + C * Lp
               + 8 * C * HW)
    vmem_limit = int(min(max(2 * est, 16 * 1024 * 1024), 48 * 1024 * 1024))

    num_steps = N // images_per_step
    B = images_per_step

    def build(single_buffer_consts):
        const = (dict(pipeline_mode=pl.Buffered(1)) if single_buffer_consts
                 else {})
        grid_spec = pltpu.PrefetchScalarGridSpec(
            num_scalar_prefetch=0,
            grid=(num_steps,),
            in_specs=[
                pl.BlockSpec((B, C, Lp), lambda n: (n, 0, 0)),          # halo-padded x
                pl.BlockSpec((2, HW), lambda n: (0, 0), **const),        # column masks
                pl.BlockSpec((9, C, C), lambda n: (0, 0, 0), **const),   # conv1 taps
                pl.BlockSpec((C, 1), lambda n: (0, 0), **const),         # gamma1
                pl.BlockSpec((C, 1), lambda n: (0, 0), **const),         # beta1
                pl.BlockSpec((9, C, C), lambda n: (0, 0, 0), **const),   # conv2 taps
                pl.BlockSpec((C, 1), lambda n: (0, 0), **const),         # gamma2
                pl.BlockSpec((C, 1), lambda n: (0, 0), **const),         # beta2
            ],
            out_specs=pl.BlockSpec((B, C, HW), lambda n: (n, 0, 0)),
            scratch_shapes=[pltpu.VMEM((C, Lp), mxu_dtype)],             # halo-padded y
        )
        return pl.pallas_call(
            kernel,
            out_shape=jax.ShapeDtypeStruct((N, C, HW), jnp.float32),
            grid_spec=grid_spec,
            compiler_params=pltpu.CompilerParams(
                dimension_semantics=("parallel",),
                vmem_limit_bytes=vmem_limit),
        )

    args = (xp, hmask, w1t, g1r, b1r, w2t, g2r, b2r)
    try:
        out = build(True)(*args)     # single-buffer the grid-invariant operands
    except Exception:
        # pipeline_mode=pl.Buffered(1) not honored by this jax/libtpu build ->
        # fall back to default double buffering (correctness unaffected).
        out = build(False)(*args)

    return out.reshape(N, C, H, W)


def _reference(x, w1, g1, b1, w2, g2, b2):
    def conv(x, w):
        return jax.lax.conv_general_dilated(
            x, w, (1, 1), "SAME",
            dimension_numbers=("NCHW", "OIHW", "NCHW"))

    def inorm(x, g, b):
        m = x.mean(axis=(2, 3), keepdims=True)
        v = ((x - m) ** 2).mean(axis=(2, 3), keepdims=True)
        xn = (x - m) * jax.lax.rsqrt(v + EPS)
        return xn * g.reshape(1, -1, 1, 1) + b.reshape(1, -1, 1, 1)

    h = jnp.maximum(inorm(conv(x, w1), g1, b1), 0.0)
    return x + inorm(conv(h, w2), g2, b2)


if __name__ == "__main__":
    # Residual add requires dim_in == dim_out; C=8 keeps the f32 sublane pack.
    N, C, H, W = 2, 8, 16, 16

    key = jax.random.PRNGKey(0)
    kx, k1, k2, kg1, kb1, kg2, kb2 = jax.random.split(key, 7)

    x = jax.random.normal(kx, (N, C, H, W), jnp.float32)
    w1 = jax.random.normal(k1, (C, C, 3, 3), jnp.float32) * 0.1
    w2 = jax.random.normal(k2, (C, C, 3, 3), jnp.float32) * 0.1
    # InstanceNorm2d(affine=True) params, perturbed so the affine path is exercised.
    g1 = 1.0 + 0.1 * jax.random.normal(kg1, (C,), jnp.float32)
    b1 = 0.1 * jax.random.normal(kb1, (C,), jnp.float32)
    g2 = 1.0 + 0.1 * jax.random.normal(kg2, (C,), jnp.float32)
    b2 = 0.1 * jax.random.normal(kb2, (C,), jnp.float32)

    out = residual_block(x, w1, g1, b1, w2, g2, b2)
    out = jax.block_until_ready(out)

    ref = jax.block_until_ready(_reference(x, w1, g1, b1, w2, g2, b2))
    np.testing.assert_allclose(np.asarray(out), np.asarray(ref),
                               rtol=2e-4, atol=2e-4)
    print("KERNEL_OK")
</pallas_src>

<mosaic_0001>
module attributes {stable_mosaic.version = 11 : i64} {
  func.func @_residual_block_kernel(%arg0: i32, %arg1: memref<1x8x288xf32, #tpu.memory_space<vmem>>, %arg2: memref<2x256xf32, #tpu.memory_space<vmem>>, %arg3: memref<9x8x8xf32, #tpu.memory_space<vmem>>, %arg4: memref<8x1xf32, #tpu.memory_space<vmem>>, %arg5: memref<8x1xf32, #tpu.memory_space<vmem>>, %arg6: memref<9x8x8xf32, #tpu.memory_space<vmem>>, %arg7: memref<8x1xf32, #tpu.memory_space<vmem>>, %arg8: memref<8x1xf32, #tpu.memory_space<vmem>>, %arg9: memref<1x8x256xf32, #tpu.memory_space<vmem>>, %arg10: memref<8x288xf32, #tpu.memory_space<vmem>>) attributes {dimension_semantics = [#tpu.dimension_semantics<parallel>], iteration_bounds = array<i64: 2>, scalar_prefetch = 0 : i64, scratch_operands = 1 : i64, tpu.core_type = #tpu.core_type<tc>, window_params = [{transform_indices = @transform_0, window_bounds = array<i64: 1, 8, 288>}, {pipeline_mode = #tpu.pipeline_mode<synchronous>, transform_indices = @transform_1, window_bounds = array<i64: 2, 256>}, {pipeline_mode = #tpu.pipeline_mode<synchronous>, transform_indices = @transform_2, window_bounds = array<i64: 9, 8, 8>}, {pipeline_mode = #tpu.pipeline_mode<synchronous>, transform_indices = @transform_3, window_bounds = array<i64: 8, 1>}, {pipeline_mode = #tpu.pipeline_mode<synchronous>, transform_indices = @transform_4, window_bounds = array<i64: 8, 1>}, {pipeline_mode = #tpu.pipeline_mode<synchronous>, transform_indices = @transform_5, window_bounds = array<i64: 9, 8, 8>}, {pipeline_mode = #tpu.pipeline_mode<synchronous>, transform_indices = @transform_6, window_bounds = array<i64: 8, 1>}, {pipeline_mode = #tpu.pipeline_mode<synchronous>, transform_indices = @transform_7, window_bounds = array<i64: 8, 1>}, {transform_indices = @transform_8, window_bounds = array<i64: 1, 8, 256>}]} {
    %cst = arith.constant 0.000000e+00 : f32
    %0 = vector.broadcast %cst : f32 to vector<8x16xf32>
    %c0 = arith.constant 0 : index
    %c0_0 = arith.constant 0 : index
    %1 = vector.load %arg10[%c0, %c0_0] : memref<8x288xf32, #tpu.memory_space<vmem>>, vector<8x16xf32>
    tpu.vector_store %arg10[%c0, %c0_0], %0 {strides = array<i32>} : memref<8x288xf32, #tpu.memory_space<vmem>>, vector<8x16xf32>,
    %cst_1 = arith.constant 0.000000e+00 : f32
    %2 = vector.broadcast %cst_1 : f32 to vector<8x16xf32>
    %c0_2 = arith.constant 0 : index
    %c272 = arith.constant 272 : index
    %3 = vector.load %arg10[%c0_2, %c272] : memref<8x288xf32, #tpu.memory_space<vmem>>, vector<8x16xf32>
    tpu.vector_store %arg10[%c0_2, %c272], %2 {strides = array<i32>} : memref<8x288xf32, #tpu.memory_space<vmem>>, vector<8x16xf32>,
    %c0_3 = arith.constant 0 : index
    %c0_4 = arith.constant 0 : index
    %c0_5 = arith.constant 0 : index
    %4 = vector.load %arg1[%c0_3, %c0_4, %c0_5] : memref<1x8x288xf32, #tpu.memory_space<vmem>>, vector<1x8x288xf32>
    %5 = vector.shape_cast %4 : vector<1x8x288xf32> to vector<8x288xf32>
    %6 = vector.extract_strided_slice %5 {offsets = [0, 16], sizes = [8, 256], strides = [1, 1]} : vector<8x288xf32> to vector<8x256xf32>
    %7 = vector.extract_strided_slice %5 {offsets = [0, 0], sizes = [8, 256], strides = [1, 1]} : vector<8x288xf32> to vector<8x256xf32>
    %c0_6 = arith.constant 0 : index
    %c0_7 = arith.constant 0 : index
    %c0_8 = arith.constant 0 : index
    %8 = vector.load %arg3[%c0_6, %c0_7, %c0_8] : memref<9x8x8xf32, #tpu.memory_space<vmem>>, vector<1x8x8xf32>
    %9 = vector.shape_cast %8 : vector<1x8x8xf32> to vector<8x8xf32>
    %cst_9 = arith.constant dense<0.000000e+00> : vector<8x256xf32>
    %10 = tpu.matmul %9, %7, %cst_9 {dimension_numbers = #tpu.dot_dimension_numbers<[1], [0], [0], [1], [0, 0, 1, 1], [], []>} : vector<8x8xf32>, vector<8x256xf32>, vector<8x256xf32> -> vector<8x256xf32>
    %c1 = arith.constant 1 : index
    %c0_10 = arith.constant 0 : index
    %c0_11 = arith.constant 0 : index
    %11 = vector.load %arg3[%c1, %c0_10, %c0_11] : memref<9x8x8xf32, #tpu.memory_space<vmem>>, vector<1x8x8xf32>
    %12 = vector.shape_cast %11 : vector<1x8x8xf32> to vector<8x8xf32>
    %cst_12 = arith.constant dense<0.000000e+00> : vector<8x256xf32>
    %13 = tpu.matmul %12, %7, %cst_12 {dimension_numbers = #tpu.dot_dimension_numbers<[1], [0], [0], [1], [0, 0, 1, 1], [], []>} : vector<8x8xf32>, vector<8x256xf32>, vector<8x256xf32> -> vector<8x256xf32>
    %c2 = arith.constant 2 : index
    %c0_13 = arith.constant 0 : index
    %c0_14 = arith.constant 0 : index
    %14 = vector.load %arg3[%c2, %c0_13, %c0_14] : memref<9x8x8xf32, #tpu.memory_space<vmem>>, vector<1x8x8xf32>
    %15 = vector.shape_cast %14 : vector<1x8x8xf32> to vector<8x8xf32>
    %cst_15 = arith.constant dense<0.000000e+00> : vector<8x256xf32>
    %16 = tpu.matmul %15, %7, %cst_15 {dimension_numbers = #tpu.dot_dimension_numbers<[1], [0], [0], [1], [0, 0, 1, 1], [], []>} : vector<8x8xf32>, vector<8x256xf32>, vector<8x256xf32> -> vector<8x256xf32>
    %17 = vector.extract_strided_slice %5 {offsets = [0, 16], sizes = [8, 256], strides = [1, 1]} : vector<8x288xf32> to vector<8x256xf32>
    %c3 = arith.constant 3 : index
    %c0_16 = arith.constant 0 : index
    %c0_17 = arith.constant 0 : index
    %18 = vector.load %arg3[%c3, %c0_16, %c0_17] : memref<9x8x8xf32, #tpu.memory_space<vmem>>, vector<1x8x8xf32>
    %19 = vector.shape_cast %18 : vector<1x8x8xf32> to vector<8x8xf32>
    %cst_18 = arith.constant dense<0.000000e+00> : vector<8x256xf32>
    %20 = tpu.matmul %19, %17, %cst_18 {dimension_numbers = #tpu.dot_dimension_numbers<[1], [0], [0], [1], [0, 0, 1, 1], [], []>} : vector<8x8xf32>, vector<8x256xf32>, vector<8x256xf32> -> vector<8x256xf32>
    %21 = arith.addf %10, %20 : vector<8x256xf32>
    %c4 = arith.constant 4 : index
    %c0_19 = arith.constant 0 : index
    %c0_20 = arith.constant 0 : index
    %22 = vector.load %arg3[%c4, %c0_19, %c0_20] : memref<9x8x8xf32, #tpu.memory_space<vmem>>, vector<1x8x8xf32>
    %23 = vector.shape_cast %22 : vector<1x8x8xf32> to vector<8x8xf32>
    %cst_21 = arith.constant dense<0.000000e+00> : vector<8x256xf32>
    %24 = tpu.matmul %23, %17, %cst_21 {dimension_numbers = #tpu.dot_dimension_numbers<[1], [0], [0], [1], [0, 0, 1, 1], [], []>} : vector<8x8xf32>, vector<8x256xf32>, vector<8x256xf32> -> vector<8x256xf32>
    %25 = arith.addf %13, %24 : vector<8x256xf32>
    %c5 = arith.constant 5 : index
    %c0_22 = arith.constant 0 : index
    %c0_23 = arith.constant 0 : index
    %26 = vector.load %arg3[%c5, %c0_22, %c0_23] : memref<9x8x8xf32, #tpu.memory_space<vmem>>, vector<1x8x8xf32>
    %27 = vector.shape_cast %26 : vector<1x8x8xf32> to vector<8x8xf32>
    %cst_24 = arith.constant dense<0.000000e+00> : vector<8x256xf32>
    %28 = tpu.matmul %27, %17, %cst_24 {dimension_numbers = #tpu.dot_dimension_numbers<[1], [0], [0], [1], [0, 0, 1, 1], [], []>} : vector<8x8xf32>, vector<8x256xf32>, vector<8x256xf32> -> vector<8x256xf32>
    %29 = arith.addf %16, %28 : vector<8x256xf32>
    %30 = vector.extract_strided_slice %5 {offsets = [0, 32], sizes = [8, 256], strides = [1, 1]} : vector<8x288xf32> to vector<8x256xf32>
    %c6 = arith.constant 6 : index
    %c0_25 = arith.constant 0 : index
    %c0_26 = arith.constant 0 : index
    %31 = vector.load %arg3[%c6, %c0_25, %c0_26] : memref<9x8x8xf32, #tpu.memory_space<vmem>>, vector<1x8x8xf32>
    %32 = vector.shape_cast %31 : vector<1x8x8xf32> to vector<8x8xf32>
    %cst_27 = arith.constant dense<0.000000e+00> : vector<8x256xf32>
    %33 = tpu.matmul %32, %30, %cst_27 {dimension_numbers = #tpu.dot_dimension_numbers<[1], [0], [0], [1], [0, 0, 1, 1], [], []>} : vector<8x8xf32>, vector<8x256xf32>, vector<8x256xf32> -> vector<8x256xf32>
    %34 = arith.addf %21, %33 : vector<8x256xf32>
    %c7 = arith.constant 7 : index
    %c0_28 = arith.constant 0 : index
    %c0_29 = arith.constant 0 : index
    %35 = vector.load %arg3[%c7, %c0_28, %c0_29] : memref<9x8x8xf32, #tpu.memory_space<vmem>>, vector<1x8x8xf32>
    %36 = vector.shape_cast %35 : vector<1x8x8xf32> to vector<8x8xf32>
    %cst_30 = arith.constant dense<0.000000e+00> : vector<8x256xf32>
    %37 = tpu.matmul %36, %30, %cst_30 {dimension_numbers = #tpu.dot_dimension_numbers<[1], [0], [0], [1], [0, 0, 1, 1], [], []>} : vector<8x8xf32>, vector<8x256xf32>, vector<8x256xf32> -> vector<8x256xf32>
    %38 = arith.addf %25, %37 : vector<8x256xf32>
    %c8 = arith.constant 8 : index
    %c0_31 = arith.constant 0 : index
    %c0_32 = arith.constant 0 : index
    %39 = vector.load %arg3[%c8, %c0_31, %c0_32] : memref<9x8x8xf32, #tpu.memory_space<vmem>>, vector<1x8x8xf32>
    %40 = vector.shape_cast %39 : vector<1x8x8xf32> to vector<8x8xf32>
    %cst_33 = arith.constant dense<0.000000e+00> : vector<8x256xf32>
    %41 = tpu.matmul %40, %30, %cst_33 {dimension_numbers = #tpu.dot_dimension_numbers<[1], [0], [0], [1], [0, 0, 1, 1], [], []>} : vector<8x8xf32>, vector<8x256xf32>, vector<8x256xf32> -> vector<8x256xf32>
    %42 = arith.addf %29, %41 : vector<8x256xf32>
    %c1_i32 = arith.constant 1 : i32
    %43 = tpu.dynamic_rotate %34 by %c1_i32 dim 1 : vector<8x256xf32>, i32 -> vector<8x256xf32>
    %c0_34 = arith.constant 0 : index
    %c0_35 = arith.constant 0 : index
    %44 = vector.load %arg2[%c0_34, %c0_35] : memref<2x256xf32, #tpu.memory_space<vmem>>, vector<1x256xf32>
    %45 = vector.broadcast %44 : vector<1x256xf32> to vector<8x256xf32>
    %46 = arith.mulf %43, %45 : vector<8x256xf32>
    %c255_i32 = arith.constant 255 : i32
    %47 = tpu.dynamic_rotate %42 by %c255_i32 dim 1 : vector<8x256xf32>, i32 -> vector<8x256xf32>
    %c1_36 = arith.constant 1 : index
    %c0_37 = arith.constant 0 : index
    %48 = vector.load %arg2[%c1_36, %c0_37] : memref<2x256xf32, #tpu.memory_space<vmem>>, vector<1x256xf32>
    %49 = vector.broadcast %48 : vector<1x256xf32> to vector<8x256xf32>
    %50 = arith.mulf %47, %49 : vector<8x256xf32>
    %51 = arith.addf %38, %46 : vector<8x256xf32>
    %52 = arith.addf %51, %50 : vector<8x256xf32>
    %cst_38 = arith.constant dense<0.000000e+00> : vector<8xf32>
    %53 = vector.multi_reduction <add>, %52, %cst_38 [1] : vector<8x256xf32> to vector<8xf32>
    %54 = vector.shape_cast %53 : vector<8xf32> to vector<8x1xf32>
    %cst_39 = arith.constant 3.906250e-03 : f32
    %55 = vector.broadcast %cst_39 : f32 to vector<8x1xf32>
    %56 = arith.mulf %54, %55 : vector<8x1xf32>
    %57 = vector.broadcast %56 : vector<8x1xf32> to vector<8x256xf32>
    %58 = arith.subf %52, %57 : vector<8x256xf32>
    %59 = arith.mulf %58, %58 : vector<8x256xf32>
    %cst_40 = arith.constant dense<0.000000e+00> : vector<8xf32>
    %60 = vector.multi_reduction <add>, %59, %cst_40 [1] : vector<8x256xf32> to vector<8xf32>
    %61 = vector.shape_cast %60 : vector<8xf32> to vector<8x1xf32>
    %cst_41 = arith.constant 3.906250e-03 : f32
    %62 = vector.broadcast %cst_41 : f32 to vector<8x1xf32>
    %63 = arith.mulf %61, %62 : vector<8x1xf32>
    %c0_42 = arith.constant 0 : index
    %c0_43 = arith.constant 0 : index
    %64 = vector.load %arg4[%c0_42, %c0_43] : memref<8x1xf32, #tpu.memory_space<vmem>>, vector<8x1xf32>
    %cst_44 = arith.constant 9.99999974E-6 : f32
    %65 = vector.broadcast %cst_44 : f32 to vector<8x1xf32>
    %66 = arith.addf %63, %65 : vector<8x1xf32>
    %67 = math.rsqrt %66 : vector<8x1xf32>
    %68 = arith.mulf %64, %67 : vector<8x1xf32>
    %69 = vector.broadcast %68 : vector<8x1xf32> to vector<8x256xf32>
    %70 = arith.mulf %58, %69 : vector<8x256xf32>
    %c0_45 = arith.constant 0 : index
    %c0_46 = arith.constant 0 : index
    %71 = vector.load %arg5[%c0_45, %c0_46] : memref<8x1xf32, #tpu.memory_space<vmem>>, vector<8x1xf32>
    %72 = vector.broadcast %71 : vector<8x1xf32> to vector<8x256xf32>
    %73 = arith.addf %70, %72 : vector<8x256xf32>
    %cst_47 = arith.constant 0.000000e+00 : f32
    %74 = vector.broadcast %cst_47 : f32 to vector<8x256xf32>
    %75 = arith.maximumf %73, %74 : vector<8x256xf32>
    %c0_48 = arith.constant 0 : index
    %c16 = arith.constant 16 : index
    %76 = vector.load %arg10[%c0_48, %c16] : memref<8x288xf32, #tpu.memory_space<vmem>>, vector<8x256xf32>
    tpu.vector_store %arg10[%c0_48, %c16], %75 {strides = array<i32>} : memref<8x288xf32, #tpu.memory_space<vmem>>, vector<8x256xf32>,
    %c0_49 = arith.constant 0 : index
    %c0_50 = arith.constant 0 : index
    %77 = vector.load %arg10[%c0_49, %c0_50] : memref<8x288xf32, #tpu.memory_space<vmem>>, vector<8x256xf32>
    %c0_51 = arith.constant 0 : index
    %c0_52 = arith.constant 0 : index
    %c0_53 = arith.constant 0 : index
    %78 = vector.load %arg6[%c0_51, %c0_52, %c0_53] : memref<9x8x8xf32, #tpu.memory_space<vmem>>, vector<1x8x8xf32>
    %79 = vector.shape_cast %78 : vector<1x8x8xf32> to vector<8x8xf32>
    %cst_54 = arith.constant dense<0.000000e+00> : vector<8x256xf32>
    %80 = tpu.matmul %79, %77, %cst_54 {dimension_numbers = #tpu.dot_dimension_numbers<[1], [0], [0], [1], [0, 0, 1, 1], [], []>} : vector<8x8xf32>, vector<8x256xf32>, vector<8x256xf32> -> vector<8x256xf32>
    %c1_55 = arith.constant 1 : index
    %c0_56 = arith.constant 0 : index
    %c0_57 = arith.constant 0 : index
    %81 = vector.load %arg6[%c1_55, %c0_56, %c0_57] : memref<9x8x8xf32, #tpu.memory_space<vmem>>, vector<1x8x8xf32>
    %82 = vector.shape_cast %81 : vector<1x8x8xf32> to vector<8x8xf32>
    %cst_58 = arith.constant dense<0.000000e+00> : vector<8x256xf32>
    %83 = tpu.matmul %82, %77, %cst_58 {dimension_numbers = #tpu.dot_dimension_numbers<[1], [0], [0], [1], [0, 0, 1, 1], [], []>} : vector<8x8xf32>, vector<8x256xf32>, vector<8x256xf32> -> vector<8x256xf32>
    %c2_59 = arith.constant 2 : index
    %c0_60 = arith.constant 0 : index
    %c0_61 = arith.constant 0 : index
    %84 = vector.load %arg6[%c2_59, %c0_60, %c0_61] : memref<9x8x8xf32, #tpu.memory_space<vmem>>, vector<1x8x8xf32>
    %85 = vector.shape_cast %84 : vector<1x8x8xf32> to vector<8x8xf32>
    %cst_62 = arith.constant dense<0.000000e+00> : vector<8x256xf32>
    %86 = tpu.matmul %85, %77, %cst_62 {dimension_numbers = #tpu.dot_dimension_numbers<[1], [0], [0], [1], [0, 0, 1, 1], [], []>} : vector<8x8xf32>, vector<8x256xf32>, vector<8x256xf32> -> vector<8x256xf32>
    %c0_63 = arith.constant 0 : index
    %c16_64 = arith.constant 16 : index
    %87 = vector.load %arg10[%c0_63, %c16_64] : memref<8x288xf32, #tpu.memory_space<vmem>>, vector<8x256xf32>
    %c3_65 = arith.constant 3 : index
    %c0_66 = arith.constant 0 : index
    %c0_67 = arith.constant 0 : index
    %88 = vector.load %arg6[%c3_65, %c0_66, %c0_67] : memref<9x8x8xf32, #tpu.memory_space<vmem>>, vector<1x8x8xf32>
    %89 = vector.shape_cast %88 : vector<1x8x8xf32> to vector<8x8xf32>
    %cst_68 = arith.constant dense<0.000000e+00> : vector<8x256xf32>
    %90 = tpu.matmul %89, %87, %cst_68 {dimension_numbers = #tpu.dot_dimension_numbers<[1], [0], [0], [1], [0, 0, 1, 1], [], []>} : vector<8x8xf32>, vector<8x256xf32>, vector<8x256xf32> -> vector<8x256xf32>
    %91 = arith.addf %80, %90 : vector<8x256xf32>
    %c4_69 = arith.constant 4 : index
    %c0_70 = arith.constant 0 : index
    %c0_71 = arith.constant 0 : index
    %92 = vector.load %arg6[%c4_69, %c0_70, %c0_71] : memref<9x8x8xf32, #tpu.memory_space<vmem>>, vector<1x8x8xf32>
    %93 = vector.shape_cast %92 : vector<1x8x8xf32> to vector<8x8xf32>
    %cst_72 = arith.constant dense<0.000000e+00> : vector<8x256xf32>
    %94 = tpu.matmul %93, %87, %cst_72 {dimension_numbers = #tpu.dot_dimension_numbers<[1], [0], [0], [1], [0, 0, 1, 1], [], []>} : vector<8x8xf32>, vector<8x256xf32>, vector<8x256xf32> -> vector<8x256xf32>
    %95 = arith.addf %83, %94 : vector<8x256xf32>
    %c5_73 = arith.constant 5 : index
    %c0_74 = arith.constant 0 : index
    %c0_75 = arith.constant 0 : index
    %96 = vector.load %arg6[%c5_73, %c0_74, %c0_75] : memref<9x8x8xf32, #tpu.memory_space<vmem>>, vector<1x8x8xf32>
    %97 = vector.shape_cast %96 : vector<1x8x8xf32> to vector<8x8xf32>
    %cst_76 = arith.constant dense<0.000000e+00> : vector<8x256xf32>
    %98 = tpu.matmul %97, %87, %cst_76 {dimension_numbers = #tpu.dot_dimension_numbers<[1], [0], [0], [1], [0, 0, 1, 1], [], []>} : vector<8x8xf32>, vector<8x256xf32>, vector<8x256xf32> -> vector<8x256xf32>
    %99 = arith.addf %86, %98 : vector<8x256xf32>
    %c0_77 = arith.constant 0 : index
    %c32 = arith.constant 32 : index
    %100 = vector.load %arg10[%c0_77, %c32] : memref<8x288xf32, #tpu.memory_space<vmem>>, vector<8x256xf32>
    %c6_78 = arith.constant 6 : index
    %c0_79 = arith.constant 0 : index
    %c0_80 = arith.constant 0 : index
    %101 = vector.load %arg6[%c6_78, %c0_79, %c0_80] : memref<9x8x8xf32, #tpu.memory_space<vmem>>, vector<1x8x8xf32>
    %102 = vector.shape_cast %101 : vector<1x8x8xf32> to vector<8x8xf32>
    %cst_81 = arith.constant dense<0.000000e+00> : vector<8x256xf32>
    %103 = tpu.matmul %102, %100, %cst_81 {dimension_numbers = #tpu.dot_dimension_numbers<[1], [0], [0], [1], [0, 0, 1, 1], [], []>} : vector<8x8xf32>, vector<8x256xf32>, vector<8x256xf32> -> vector<8x256xf32>
    %104 = arith.addf %91, %103 : vector<8x256xf32>
    %c7_82 = arith.constant 7 : index
    %c0_83 = arith.constant 0 : index
    %c0_84 = arith.constant 0 : index
    %105 = vector.load %arg6[%c7_82, %c0_83, %c0_84] : memref<9x8x8xf32, #tpu.memory_space<vmem>>, vector<1x8x8xf32>
    %106 = vector.shape_cast %105 : vector<1x8x8xf32> to vector<8x8xf32>
    %cst_85 = arith.constant dense<0.000000e+00> : vector<8x256xf32>
    %107 = tpu.matmul %106, %100, %cst_85 {dimension_numbers = #tpu.dot_dimension_numbers<[1], [0], [0], [1], [0, 0, 1, 1], [], []>} : vector<8x8xf32>, vector<8x256xf32>, vector<8x256xf32> -> vector<8x256xf32>
    %108 = arith.addf %95, %107 : vector<8x256xf32>
    %c8_86 = arith.constant 8 : index
    %c0_87 = arith.constant 0 : index
    %c0_88 = arith.constant 0 : index
    %109 = vector.load %arg6[%c8_86, %c0_87, %c0_88] : memref<9x8x8xf32, #tpu.memory_space<vmem>>, vector<1x8x8xf32>
    %110 = vector.shape_cast %109 : vector<1x8x8xf32> to vector<8x8xf32>
    %cst_89 = arith.constant dense<0.000000e+00> : vector<8x256xf32>
    %111 = tpu.matmul %110, %100, %cst_89 {dimension_numbers = #tpu.dot_dimension_numbers<[1], [0], [0], [1], [0, 0, 1, 1], [], []>} : vector<8x8xf32>, vector<8x256xf32>, vector<8x256xf32> -> vector<8x256xf32>
    %112 = arith.addf %99, %111 : vector<8x256xf32>
    %c1_i32_90 = arith.constant 1 : i32
    %113 = tpu.dynamic_rotate %104 by %c1_i32_90 dim 1 : vector<8x256xf32>, i32 -> vector<8x256xf32>
    %c0_91 = arith.constant 0 : index
    %c0_92 = arith.constant 0 : index
    %114 = vector.load %arg2[%c0_91, %c0_92] : memref<2x256xf32, #tpu.memory_space<vmem>>, vector<1x256xf32>
    %115 = vector.broadcast %114 : vector<1x256xf32> to vector<8x256xf32>
    %116 = arith.mulf %113, %115 : vector<8x256xf32>
    %c255_i32_93 = arith.constant 255 : i32
    %117 = tpu.dynamic_rotate %112 by %c255_i32_93 dim 1 : vector<8x256xf32>, i32 -> vector<8x256xf32>
    %c1_94 = arith.constant 1 : index
    %c0_95 = arith.constant 0 : index
    %118 = vector.load %arg2[%c1_94, %c0_95] : memref<2x256xf32, #tpu.memory_space<vmem>>, vector<1x256xf32>
    %119 = vector.broadcast %118 : vector<1x256xf32> to vector<8x256xf32>
    %120 = arith.mulf %117, %119 : vector<8x256xf32>
    %121 = arith.addf %108, %116 : vector<8x256xf32>
    %122 = arith.addf %121, %120 : vector<8x256xf32>
    %cst_96 = arith.constant dense<0.000000e+00> : vector<8xf32>
    %123 = vector.multi_reduction <add>, %122, %cst_96 [1] : vector<8x256xf32> to vector<8xf32>
    %124 = vector.shape_cast %123 : vector<8xf32> to vector<8x1xf32>
    %cst_97 = arith.constant 3.906250e-03 : f32
    %125 = vector.broadcast %cst_97 : f32 to vector<8x1xf32>
    %126 = arith.mulf %124, %125 : vector<8x1xf32>
    %127 = vector.broadcast %126 : vector<8x1xf32> to vector<8x256xf32>
    %128 = arith.subf %122, %127 : vector<8x256xf32>
    %129 = arith.mulf %128, %128 : vector<8x256xf32>
    %cst_98 = arith.constant dense<0.000000e+00> : vector<8xf32>
    %130 = vector.multi_reduction <add>, %129, %cst_98 [1] : vector<8x256xf32> to vector<8xf32>
    %131 = vector.shape_cast %130 : vector<8xf32> to vector<8x1xf32>
    %cst_99 = arith.constant 3.906250e-03 : f32
    %132 = vector.broadcast %cst_99 : f32 to vector<8x1xf32>
    %133 = arith.mulf %131, %132 : vector<8x1xf32>
    %c0_100 = arith.constant 0 : index
    %c0_101 = arith.constant 0 : index
    %134 = vector.load %arg7[%c0_100, %c0_101] : memref<8x1xf32, #tpu.memory_space<vmem>>, vector<8x1xf32>
    %cst_102 = arith.constant 9.99999974E-6 : f32
    %135 = vector.broadcast %cst_102 : f32 to vector<8x1xf32>
    %136 = arith.addf %133, %135 : vector<8x1xf32>
    %137 = math.rsqrt %136 : vector<8x1xf32>
    %138 = arith.mulf %134, %137 : vector<8x1xf32>
    %139 = vector.broadcast %138 : vector<8x1xf32> to vector<8x256xf32>
    %140 = arith.mulf %128, %139 : vector<8x256xf32>
    %c0_103 = arith.constant 0 : index
    %c0_104 = arith.constant 0 : index
    %141 = vector.load %arg8[%c0_103, %c0_104] : memref<8x1xf32, #tpu.memory_space<vmem>>, vector<8x1xf32>
    %142 = vector.broadcast %141 : vector<8x1xf32> to vector<8x256xf32>
    %143 = arith.addf %140, %142 : vector<8x256xf32>
    %144 = arith.addf %6, %143 : vector<8x256xf32>
    %c0_105 = arith.constant 0 : index
    %c0_106 = arith.constant 0 : index
    %c0_107 = arith.constant 0 : index
    %145 = vector.load %arg9[%c0_105, %c0_106, %c0_107] : memref<1x8x256xf32, #tpu.memory_space<vmem>>, vector<1x8x256xf32>
    %146 = vector.shape_cast %145 : vector<1x8x256xf32> to vector<8x256xf32>
    %147 = vector.shape_cast %144 : vector<8x256xf32> to vector<1x8x256xf32>
    tpu.vector_store %arg9[%c0_105, %c0_106, %c0_107], %147 {strides = array<i32>} : memref<1x8x256xf32, #tpu.memory_space<vmem>>, vector<1x8x256xf32>,
    return
  }
  func.func @transform_0(%arg0: i32) -> (i32, i32, i32) {
    %c0_i32 = arith.constant 0 : i32
    %c0_i32_0 = arith.constant 0 : i32
    %c0_i32_1 = arith.constant 0 : i32
    return %arg0, %c0_i32, %c0_i32_0 : i32, i32, i32
  }
  func.func @transform_1(%arg0: i32) -> (i32, i32) {
    %c0_i32 = arith.constant 0 : i32
    %c0_i32_0 = arith.constant 0 : i32
    %c0_i32_1 = arith.constant 0 : i32
    return %c0_i32, %c0_i32_0 : i32, i32
  }
  func.func @transform_2(%arg0: i32) -> (i32, i32, i32) {
    %c0_i32 = arith.constant 0 : i32
    %c0_i32_0 = arith.constant 0 : i32
    %c0_i32_1 = arith.constant 0 : i32
    %c0_i32_2 = arith.constant 0 : i32
    return %c0_i32, %c0_i32_0, %c0_i32_1 : i32, i32, i32
  }
  func.func @transform_3(%arg0: i32) -> (i32, i32) {
    %c0_i32 = arith.constant 0 : i32
    %c0_i32_0 = arith.constant 0 : i32
    %c0_i32_1 = arith.constant 0 : i32
    return %c0_i32, %c0_i32_0 : i32, i32
  }
  func.func @transform_4(%arg0: i32) -> (i32, i32) {
    %c0_i32 = arith.constant 0 : i32
    %c0_i32_0 = arith.constant 0 : i32
    %c0_i32_1 = arith.constant 0 : i32
    return %c0_i32, %c0_i32_0 : i32, i32
  }
  func.func @transform_5(%arg0: i32) -> (i32, i32, i32) {
    %c0_i32 = arith.constant 0 : i32
    %c0_i32_0 = arith.constant 0 : i32
    %c0_i32_1 = arith.constant 0 : i32
    %c0_i32_2 = arith.constant 0 : i32
    return %c0_i32, %c0_i32_0, %c0_i32_1 : i32, i32, i32
  }
  func.func @transform_6(%arg0: i32) -> (i32, i32) {
    %c0_i32 = arith.constant 0 : i32
    %c0_i32_0 = arith.constant 0 : i32
    %c0_i32_1 = arith.constant 0 : i32
    return %c0_i32, %c0_i32_0 : i32, i32
  }
  func.func @transform_7(%arg0: i32) -> (i32, i32) {
    %c0_i32 = arith.constant 0 : i32
    %c0_i32_0 = arith.constant 0 : i32
    %c0_i32_1 = arith.constant 0 : i32
    return %c0_i32, %c0_i32_0 : i32, i32
  }
  func.func @transform_8(%arg0: i32) -> (i32, i32, i32) {
    %c0_i32 = arith.constant 0 : i32
    %c0_i32_0 = arith.constant 0 : i32
    %c0_i32_1 = arith.constant 0 : i32
    return %arg0, %c0_i32, %c0_i32_0 : i32, i32, i32
  }
}

module attributes {stable_mosaic.version = 11 : i64} {
  func.func @_residual_block_kernel(%arg0: i32, %arg1: memref<1x8x288xf32, #tpu.memory_space<vmem>>, %arg2: memref<2x256xf32, #tpu.memory_space<vmem>>, %arg3: memref<9x8x8xf32, #tpu.memory_space<vmem>>, %arg4: memref<8x1xf32, #tpu.memory_space<vmem>>, %arg5: memref<8x1xf32, #tpu.memory_space<vmem>>, %arg6: memref<9x8x8xf32, #tpu.memory_space<vmem>>, %arg7: memref<8x1xf32, #tpu.memory_space<vmem>>, %arg8: memref<8x1xf32, #tpu.memory_space<vmem>>, %arg9: memref<1x8x256xf32, #tpu.memory_space<vmem>>, %arg10: memref<8x288xf32, #tpu.memory_space<vmem>>) attributes {dimension_semantics = [#tpu.dimension_semantics<parallel>], iteration_bounds = array<i64: 2>, scalar_prefetch = 0 : i64, scratch_operands = 1 : i64, tpu.core_type = #tpu.core_type<tc>, window_params = [{transform_indices = @transform_0, window_bounds = array<i64: 1, 8, 288>}, {pipeline_mode = #tpu.pipeline_mode<synchronous>, transform_indices = @transform_1, window_bounds = array<i64: 2, 256>}, {pipeline_mode = #tpu.pipeline_mode<synchronous>, transform_indices = @transform_2, window_bounds = array<i64: 9, 8, 8>}, {pipeline_mode = #tpu.pipeline_mode<synchronous>, transform_indices = @transform_3, window_bounds = array<i64: 8, 1>}, {pipeline_mode = #tpu.pipeline_mode<synchronous>, transform_indices = @transform_4, window_bounds = array<i64: 8, 1>}, {pipeline_mode = #tpu.pipeline_mode<synchronous>, transform_indices = @transform_5, window_bounds = array<i64: 9, 8, 8>}, {pipeline_mode = #tpu.pipeline_mode<synchronous>, transform_indices = @transform_6, window_bounds = array<i64: 8, 1>}, {pipeline_mode = #tpu.pipeline_mode<synchronous>, transform_indices = @transform_7, window_bounds = array<i64: 8, 1>}, {transform_indices = @transform_8, window_bounds = array<i64: 1, 8, 256>}]} {
    %cst = arith.constant 0.000000e+00 : f32
    %0 = vector.broadcast %cst : f32 to vector<8x16xf32>
    %c0 = arith.constant 0 : index
    %c0_0 = arith.constant 0 : index
    %1 = vector.load %arg10[%c0, %c0_0] : memref<8x288xf32, #tpu.memory_space<vmem>>, vector<8x16xf32>
    tpu.vector_store %arg10[%c0, %c0_0], %0 {strides = array<i32>} : memref<8x288xf32, #tpu.memory_space<vmem>>, vector<8x16xf32>,
    %cst_1 = arith.constant 0.000000e+00 : f32
    %2 = vector.broadcast %cst_1 : f32 to vector<8x16xf32>
    %c0_2 = arith.constant 0 : index
    %c272 = arith.constant 272 : index
    %3 = vector.load %arg10[%c0_2, %c272] : memref<8x288xf32, #tpu.memory_space<vmem>>, vector<8x16xf32>
    tpu.vector_store %arg10[%c0_2, %c272], %2 {strides = array<i32>} : memref<8x288xf32, #tpu.memory_space<vmem>>, vector<8x16xf32>,
    %c0_3 = arith.constant 0 : index
    %c0_4 = arith.constant 0 : index
    %c0_5 = arith.constant 0 : index
    %4 = vector.load %arg1[%c0_3, %c0_4, %c0_5] : memref<1x8x288xf32, #tpu.memory_space<vmem>>, vector<1x8x288xf32>
    %5 = vector.shape_cast %4 : vector<1x8x288xf32> to vector<8x288xf32>
    %6 = vector.extract_strided_slice %5 {offsets = [0, 16], sizes = [8, 256], strides = [1, 1]} : vector<8x288xf32> to vector<8x256xf32>
    %7 = vector.extract_strided_slice %5 {offsets = [0, 0], sizes = [8, 256], strides = [1, 1]} : vector<8x288xf32> to vector<8x256xf32>
    %c0_6 = arith.constant 0 : index
    %c0_7 = arith.constant 0 : index
    %c0_8 = arith.constant 0 : index
    %8 = vector.load %arg3[%c0_6, %c0_7, %c0_8] : memref<9x8x8xf32, #tpu.memory_space<vmem>>, vector<1x8x8xf32>
    %9 = vector.shape_cast %8 : vector<1x8x8xf32> to vector<8x8xf32>
    %cst_9 = arith.constant dense<0.000000e+00> : vector<8x256xf32>
    %10 = tpu.matmul %9, %7, %cst_9 {dimension_numbers = #tpu.dot_dimension_numbers<[1], [0], [0], [1], [0, 0, 1, 1], [], []>} : vector<8x8xf32>, vector<8x256xf32>, vector<8x256xf32> -> vector<8x256xf32>
    %c1 = arith.constant 1 : index
    %c0_10 = arith.constant 0 : index
    %c0_11 = arith.constant 0 : index
    %11 = vector.load %arg3[%c1, %c0_10, %c0_11] : memref<9x8x8xf32, #tpu.memory_space<vmem>>, vector<1x8x8xf32>
    %12 = vector.shape_cast %11 : vector<1x8x8xf32> to vector<8x8xf32>
    %cst_12 = arith.constant dense<0.000000e+00> : vector<8x256xf32>
    %13 = tpu.matmul %12, %7, %cst_12 {dimension_numbers = #tpu.dot_dimension_numbers<[1], [0], [0], [1], [0, 0, 1, 1], [], []>} : vector<8x8xf32>, vector<8x256xf32>, vector<8x256xf32> -> vector<8x256xf32>
    %c2 = arith.constant 2 : index
    %c0_13 = arith.constant 0 : index
    %c0_14 = arith.constant 0 : index
    %14 = vector.load %arg3[%c2, %c0_13, %c0_14] : memref<9x8x8xf32, #tpu.memory_space<vmem>>, vector<1x8x8xf32>
    %15 = vector.shape_cast %14 : vector<1x8x8xf32> to vector<8x8xf32>
    %cst_15 = arith.constant dense<0.000000e+00> : vector<8x256xf32>
    %16 = tpu.matmul %15, %7, %cst_15 {dimension_numbers = #tpu.dot_dimension_numbers<[1], [0], [0], [1], [0, 0, 1, 1], [], []>} : vector<8x8xf32>, vector<8x256xf32>, vector<8x256xf32> -> vector<8x256xf32>
    %17 = vector.extract_strided_slice %5 {offsets = [0, 16], sizes = [8, 256], strides = [1, 1]} : vector<8x288xf32> to vector<8x256xf32>
    %c3 = arith.constant 3 : index
    %c0_16 = arith.constant 0 : index
    %c0_17 = arith.constant 0 : index
    %18 = vector.load %arg3[%c3, %c0_16, %c0_17] : memref<9x8x8xf32, #tpu.memory_space<vmem>>, vector<1x8x8xf32>
    %19 = vector.shape_cast %18 : vector<1x8x8xf32> to vector<8x8xf32>
    %cst_18 = arith.constant dense<0.000000e+00> : vector<8x256xf32>
    %20 = tpu.matmul %19, %17, %cst_18 {dimension_numbers = #tpu.dot_dimension_numbers<[1], [0], [0], [1], [0, 0, 1, 1], [], []>} : vector<8x8xf32>, vector<8x256xf32>, vector<8x256xf32> -> vector<8x256xf32>
    %21 = arith.addf %10, %20 : vector<8x256xf32>
    %c4 = arith.constant 4 : index
    %c0_19 = arith.constant 0 : index
    %c0_20 = arith.constant 0 : index
    %22 = vector.load %arg3[%c4, %c0_19, %c0_20] : memref<9x8x8xf32, #tpu.memory_space<vmem>>, vector<1x8x8xf32>
    %23 = vector.shape_cast %22 : vector<1x8x8xf32> to vector<8x8xf32>
    %cst_21 = arith.constant dense<0.000000e+00> : vector<8x256xf32>
    %24 = tpu.matmul %23, %17, %cst_21 {dimension_numbers = #tpu.dot_dimension_numbers<[1], [0], [0], [1], [0, 0, 1, 1], [], []>} : vector<8x8xf32>, vector<8x256xf32>, vector<8x256xf32> -> vector<8x256xf32>
    %25 = arith.addf %13, %24 : vector<8x256xf32>
    %c5 = arith.constant 5 : index
    %c0_22 = arith.constant 0 : index
    %c0_23 = arith.constant 0 : index
    %26 = vector.load %arg3[%c5, %c0_22, %c0_23] : memref<9x8x8xf32, #tpu.memory_space<vmem>>, vector<1x8x8xf32>
    %27 = vector.shape_cast %26 : vector<1x8x8xf32> to vector<8x8xf32>
    %cst_24 = arith.constant dense<0.000000e+00> : vector<8x256xf32>
    %28 = tpu.matmul %27, %17, %cst_24 {dimension_numbers = #tpu.dot_dimension_numbers<[1], [0], [0], [1], [0, 0, 1, 1], [], []>} : vector<8x8xf32>, vector<8x256xf32>, vector<8x256xf32> -> vector<8x256xf32>
    %29 = arith.addf %16, %28 : vector<8x256xf32>
    %30 = vector.extract_strided_slice %5 {offsets = [0, 32], sizes = [8, 256], strides = [1, 1]} : vector<8x288xf32> to vector<8x256xf32>
    %c6 = arith.constant 6 : index
    %c0_25 = arith.constant 0 : index
    %c0_26 = arith.constant 0 : index
    %31 = vector.load %arg3[%c6, %c0_25, %c0_26] : memref<9x8x8xf32, #tpu.memory_space<vmem>>, vector<1x8x8xf32>
    %32 = vector.shape_cast %31 : vector<1x8x8xf32> to vector<8x8xf32>
    %cst_27 = arith.constant dense<0.000000e+00> : vector<8x256xf32>
    %33 = tpu.matmul %32, %30, %cst_27 {dimension_numbers = #tpu.dot_dimension_numbers<[1], [0], [0], [1], [0, 0, 1, 1], [], []>} : vector<8x8xf32>, vector<8x256xf32>, vector<8x256xf32> -> vector<8x256xf32>
    %34 = arith.addf %21, %33 : vector<8x256xf32>
    %c7 = arith.constant 7 : index
    %c0_28 = arith.constant 0 : index
    %c0_29 = arith.constant 0 : index
    %35 = vector.load %arg3[%c7, %c0_28, %c0_29] : memref<9x8x8xf32, #tpu.memory_space<vmem>>, vector<1x8x8xf32>
    %36 = vector.shape_cast %35 : vector<1x8x8xf32> to vector<8x8xf32>
    %cst_30 = arith.constant dense<0.000000e+00> : vector<8x256xf32>
    %37 = tpu.matmul %36, %30, %cst_30 {dimension_numbers = #tpu.dot_dimension_numbers<[1], [0], [0], [1], [0, 0, 1, 1], [], []>} : vector<8x8xf32>, vector<8x256xf32>, vector<8x256xf32> -> vector<8x256xf32>
    %38 = arith.addf %25, %37 : vector<8x256xf32>
    %c8 = arith.constant 8 : index
    %c0_31 = arith.constant 0 : index
    %c0_32 = arith.constant 0 : index
    %39 = vector.load %arg3[%c8, %c0_31, %c0_32] : memref<9x8x8xf32, #tpu.memory_space<vmem>>, vector<1x8x8xf32>
    %40 = vector.shape_cast %39 : vector<1x8x8xf32> to vector<8x8xf32>
    %cst_33 = arith.constant dense<0.000000e+00> : vector<8x256xf32>
    %41 = tpu.matmul %40, %30, %cst_33 {dimension_numbers = #tpu.dot_dimension_numbers<[1], [0], [0], [1], [0, 0, 1, 1], [], []>} : vector<8x8xf32>, vector<8x256xf32>, vector<8x256xf32> -> vector<8x256xf32>
    %42 = arith.addf %29, %41 : vector<8x256xf32>
    %c1_i32 = arith.constant 1 : i32
    %43 = tpu.dynamic_rotate %34 by %c1_i32 dim 1 : vector<8x256xf32>, i32 -> vector<8x256xf32>
    %c0_34 = arith.constant 0 : index
    %c0_35 = arith.constant 0 : index
    %44 = vector.load %arg2[%c0_34, %c0_35] : memref<2x256xf32, #tpu.memory_space<vmem>>, vector<1x256xf32>
    %45 = vector.broadcast %44 : vector<1x256xf32> to vector<8x256xf32>
    %46 = arith.mulf %43, %45 : vector<8x256xf32>
    %c255_i32 = arith.constant 255 : i32
    %47 = tpu.dynamic_rotate %42 by %c255_i32 dim 1 : vector<8x256xf32>, i32 -> vector<8x256xf32>
    %c1_36 = arith.constant 1 : index
    %c0_37 = arith.constant 0 : index
    %48 = vector.load %arg2[%c1_36, %c0_37] : memref<2x256xf32, #tpu.memory_space<vmem>>, vector<1x256xf32>
    %49 = vector.broadcast %48 : vector<1x256xf32> to vector<8x256xf32>
    %50 = arith.mulf %47, %49 : vector<8x256xf32>
    %51 = arith.addf %38, %46 : vector<8x256xf32>
    %52 = arith.addf %51, %50 : vector<8x256xf32>
    %cst_38 = arith.constant dense<0.000000e+00> : vector<8xf32>
    %53 = vector.multi_reduction <add>, %52, %cst_38 [1] : vector<8x256xf32> to vector<8xf32>
    %54 = vector.shape_cast %53 : vector<8xf32> to vector<8x1xf32>
    %cst_39 = arith.constant 3.906250e-03 : f32
    %55 = vector.broadcast %cst_39 : f32 to vector<8x1xf32>
    %56 = arith.mulf %54, %55 : vector<8x1xf32>
    %57 = vector.broadcast %56 : vector<8x1xf32> to vector<8x256xf32>
    %58 = arith.subf %52, %57 : vector<8x256xf32>
    %59 = arith.mulf %58, %58 : vector<8x256xf32>
    %cst_40 = arith.constant dense<0.000000e+00> : vector<8xf32>
    %60 = vector.multi_reduction <add>, %59, %cst_40 [1] : vector<8x256xf32> to vector<8xf32>
    %61 = vector.shape_cast %60 : vector<8xf32> to vector<8x1xf32>
    %cst_41 = arith.constant 3.906250e-03 : f32
    %62 = vector.broadcast %cst_41 : f32 to vector<8x1xf32>
    %63 = arith.mulf %61, %62 : vector<8x1xf32>
    %c0_42 = arith.constant 0 : index
    %c0_43 = arith.constant 0 : index
    %64 = vector.load %arg4[%c0_42, %c0_43] : memref<8x1xf32, #tpu.memory_space<vmem>>, vector<8x1xf32>
    %cst_44 = arith.constant 9.99999974E-6 : f32
    %65 = vector.broadcast %cst_44 : f32 to vector<8x1xf32>
    %66 = arith.addf %63, %65 : vector<8x1xf32>
    %67 = math.rsqrt %66 : vector<8x1xf32>
    %68 = arith.mulf %64, %67 : vector<8x1xf32>
    %69 = vector.broadcast %68 : vector<8x1xf32> to vector<8x256xf32>
    %70 = arith.mulf %58, %69 : vector<8x256xf32>
    %c0_45 = arith.constant 0 : index
    %c0_46 = arith.constant 0 : index
    %71 = vector.load %arg5[%c0_45, %c0_46] : memref<8x1xf32, #tpu.memory_space<vmem>>, vector<8x1xf32>
    %72 = vector.broadcast %71 : vector<8x1xf32> to vector<8x256xf32>
    %73 = arith.addf %70, %72 : vector<8x256xf32>
    %cst_47 = arith.constant 0.000000e+00 : f32
    %74 = vector.broadcast %cst_47 : f32 to vector<8x256xf32>
    %75 = arith.maximumf %73, %74 : vector<8x256xf32>
    %c0_48 = arith.constant 0 : index
    %c16 = arith.constant 16 : index
    %76 = vector.load %arg10[%c0_48, %c16] : memref<8x288xf32, #tpu.memory_space<vmem>>, vector<8x256xf32>
    tpu.vector_store %arg10[%c0_48, %c16], %75 {strides = array<i32>} : memref<8x288xf32, #tpu.memory_space<vmem>>, vector<8x256xf32>,
    %c0_49 = arith.constant 0 : index
    %c0_50 = arith.constant 0 : index
    %77 = vector.load %arg10[%c0_49, %c0_50] : memref<8x288xf32, #tpu.memory_space<vmem>>, vector<8x256xf32>
    %c0_51 = arith.constant 0 : index
    %c0_52 = arith.constant 0 : index
    %c0_53 = arith.constant 0 : index
    %78 = vector.load %arg6[%c0_51, %c0_52, %c0_53] : memref<9x8x8xf32, #tpu.memory_space<vmem>>, vector<1x8x8xf32>
    %79 = vector.shape_cast %78 : vector<1x8x8xf32> to vector<8x8xf32>
    %cst_54 = arith.constant dense<0.000000e+00> : vector<8x256xf32>
    %80 = tpu.matmul %79, %77, %cst_54 {dimension_numbers = #tpu.dot_dimension_numbers<[1], [0], [0], [1], [0, 0, 1, 1], [], []>} : vector<8x8xf32>, vector<8x256xf32>, vector<8x256xf32> -> vector<8x256xf32>
    %c1_55 = arith.constant 1 : index
    %c0_56 = arith.constant 0 : index
    %c0_57 = arith.constant 0 : index
    %81 = vector.load %arg6[%c1_55, %c0_56, %c0_57] : memref<9x8x8xf32, #tpu.memory_space<vmem>>, vector<1x8x8xf32>
    %82 = vector.shape_cast %81 : vector<1x8x8xf32> to vector<8x8xf32>
    %cst_58 = arith.constant dense<0.000000e+00> : vector<8x256xf32>
    %83 = tpu.matmul %82, %77, %cst_58 {dimension_numbers = #tpu.dot_dimension_numbers<[1], [0], [0], [1], [0, 0, 1, 1], [], []>} : vector<8x8xf32>, vector<8x256xf32>, vector<8x256xf32> -> vector<8x256xf32>
    %c2_59 = arith.constant 2 : index
    %c0_60 = arith.constant 0 : index
    %c0_61 = arith.constant 0 : index
    %84 = vector.load %arg6[%c2_59, %c0_60, %c0_61] : memref<9x8x8xf32, #tpu.memory_space<vmem>>, vector<1x8x8xf32>
    %85 = vector.shape_cast %84 : vector<1x8x8xf32> to vector<8x8xf32>
    %cst_62 = arith.constant dense<0.000000e+00> : vector<8x256xf32>
    %86 = tpu.matmul %85, %77, %cst_62 {dimension_numbers = #tpu.dot_dimension_numbers<[1], [0], [0], [1], [0, 0, 1, 1], [], []>} : vector<8x8xf32>, vector<8x256xf32>, vector<8x256xf32> -> vector<8x256xf32>
    %c0_63 = arith.constant 0 : index
    %c16_64 = arith.constant 16 : index
    %87 = vector.load %arg10[%c0_63, %c16_64] : memref<8x288xf32, #tpu.memory_space<vmem>>, vector<8x256xf32>
    %c3_65 = arith.constant 3 : index
    %c0_66 = arith.constant 0 : index
    %c0_67 = arith.constant 0 : index
    %88 = vector.load %arg6[%c3_65, %c0_66, %c0_67] : memref<9x8x8xf32, #tpu.memory_space<vmem>>, vector<1x8x8xf32>
    %89 = vector.shape_cast %88 : vector<1x8x8xf32> to vector<8x8xf32>
    %cst_68 = arith.constant dense<0.000000e+00> : vector<8x256xf32>
    %90 = tpu.matmul %89, %87, %cst_68 {dimension_numbers = #tpu.dot_dimension_numbers<[1], [0], [0], [1], [0, 0, 1, 1], [], []>} : vector<8x8xf32>, vector<8x256xf32>, vector<8x256xf32> -> vector<8x256xf32>
    %91 = arith.addf %80, %90 : vector<8x256xf32>
    %c4_69 = arith.constant 4 : index
    %c0_70 = arith.constant 0 : index
    %c0_71 = arith.constant 0 : index
    %92 = vector.load %arg6[%c4_69, %c0_70, %c0_71] : memref<9x8x8xf32, #tpu.memory_space<vmem>>, vector<1x8x8xf32>
    %93 = vector.shape_cast %92 : vector<1x8x8xf32> to vector<8x8xf32>
    %cst_72 = arith.constant dense<0.000000e+00> : vector<8x256xf32>
    %94 = tpu.matmul %93, %87, %cst_72 {dimension_numbers = #tpu.dot_dimension_numbers<[1], [0], [0], [1], [0, 0, 1, 1], [], []>} : vector<8x8xf32>, vector<8x256xf32>, vector<8x256xf32> -> vector<8x256xf32>
    %95 = arith.addf %83, %94 : vector<8x256xf32>
    %c5_73 = arith.constant 5 : index
    %c0_74 = arith.constant 0 : index
    %c0_75 = arith.constant 0 : index
    %96 = vector.load %arg6[%c5_73, %c0_74, %c0_75] : memref<9x8x8xf32, #tpu.memory_space<vmem>>, vector<1x8x8xf32>
    %97 = vector.shape_cast %96 : vector<1x8x8xf32> to vector<8x8xf32>
    %cst_76 = arith.constant dense<0.000000e+00> : vector<8x256xf32>
    %98 = tpu.matmul %97, %87, %cst_76 {dimension_numbers = #tpu.dot_dimension_numbers<[1], [0], [0], [1], [0, 0, 1, 1], [], []>} : vector<8x8xf32>, vector<8x256xf32>, vector<8x256xf32> -> vector<8x256xf32>
    %99 = arith.addf %86, %98 : vector<8x256xf32>
    %c0_77 = arith.constant 0 : index
    %c32 = arith.constant 32 : index
    %100 = vector.load %arg10[%c0_77, %c32] : memref<8x288xf32, #tpu.memory_space<vmem>>, vector<8x256xf32>
    %c6_78 = arith.constant 6 : index
    %c0_79 = arith.constant 0 : index
    %c0_80 = arith.constant 0 : index
    %101 = vector.load %arg6[%c6_78, %c0_79, %c0_80] : memref<9x8x8xf32, #tpu.memory_space<vmem>>, vector<1x8x8xf32>
    %102 = vector.shape_cast %101 : vector<1x8x8xf32> to vector<8x8xf32>
    %cst_81 = arith.constant dense<0.000000e+00> : vector<8x256xf32>
    %103 = tpu.matmul %102, %100, %cst_81 {dimension_numbers = #tpu.dot_dimension_numbers<[1], [0], [0], [1], [0, 0, 1, 1], [], []>} : vector<8x8xf32>, vector<8x256xf32>, vector<8x256xf32> -> vector<8x256xf32>
    %104 = arith.addf %91, %103 : vector<8x256xf32>
    %c7_82 = arith.constant 7 : index
    %c0_83 = arith.constant 0 : index
    %c0_84 = arith.constant 0 : index
    %105 = vector.load %arg6[%c7_82, %c0_83, %c0_84] : memref<9x8x8xf32, #tpu.memory_space<vmem>>, vector<1x8x8xf32>
    %106 = vector.shape_cast %105 : vector<1x8x8xf32> to vector<8x8xf32>
    %cst_85 = arith.constant dense<0.000000e+00> : vector<8x256xf32>
    %107 = tpu.matmul %106, %100, %cst_85 {dimension_numbers = #tpu.dot_dimension_numbers<[1], [0], [0], [1], [0, 0, 1, 1], [], []>} : vector<8x8xf32>, vector<8x256xf32>, vector<8x256xf32> -> vector<8x256xf32>
    %108 = arith.addf %95, %107 : vector<8x256xf32>
    %c8_86 = arith.constant 8 : index
    %c0_87 = arith.constant 0 : index
    %c0_88 = arith.constant 0 : index
    %109 = vector.load %arg6[%c8_86, %c0_87, %c0_88] : memref<9x8x8xf32, #tpu.memory_space<vmem>>, vector<1x8x8xf32>
    %110 = vector.shape_cast %109 : vector<1x8x8xf32> to vector<8x8xf32>
    %cst_89 = arith.constant dense<0.000000e+00> : vector<8x256xf32>
    %111 = tpu.matmul %110, %100, %cst_89 {dimension_numbers = #tpu.dot_dimension_numbers<[1], [0], [0], [1], [0, 0, 1, 1], [], []>} : vector<8x8xf32>, vector<8x256xf32>, vector<8x256xf32> -> vector<8x256xf32>
    %112 = arith.addf %99, %111 : vector<8x256xf32>
    %c1_i32_90 = arith.constant 1 : i32
    %113 = tpu.dynamic_rotate %104 by %c1_i32_90 dim 1 : vector<8x256xf32>, i32 -> vector<8x256xf32>
    %c0_91 = arith.constant 0 : index
    %c0_92 = arith.constant 0 : index
    %114 = vector.load %arg2[%c0_91, %c0_92] : memref<2x256xf32, #tpu.memory_space<vmem>>, vector<1x256xf32>
    %115 = vector.broadcast %114 : vector<1x256xf32> to vector<8x256xf32>
    %116 = arith.mulf %113, %115 : vector<8x256xf32>
    %c255_i32_93 = arith.constant 255 : i32
    %117 = tpu.dynamic_rotate %112 by %c255_i32_93 dim 1 : vector<8x256xf32>, i32 -> vector<8x256xf32>
    %c1_94 = arith.constant 1 : index
    %c0_95 = arith.constant 0 : index
    %118 = vector.load %arg2[%c1_94, %c0_95] : memref<2x256xf32, #tpu.memory_space<vmem>>, vector<1x256xf32>
    %119 = vector.broadcast %118 : vector<1x256xf32> to vector<8x256xf32>
    %120 = arith.mulf %117, %119 : vector<8x256xf32>
    %121 = arith.addf %108, %116 : vector<8x256xf32>
    %122 = arith.addf %121, %120 : vector<8x256xf32>
    %cst_96 = arith.constant dense<0.000000e+00> : vector<8xf32>
    %123 = vector.multi_reduction <add>, %122, %cst_96 [1] : vector<8x256xf32> to vector<8xf32>
    %124 = vector.shape_cast %123 : vector<8xf32> to vector<8x1xf32>
    %cst_97 = arith.constant 3.906250e-03 : f32
    %125 = vector.broadcast %cst_97 : f32 to vector<8x1xf32>
    %126 = arith.mulf %124, %125 : vector<8x1xf32>
    %127 = vector.broadcast %126 : vector<8x1xf32> to vector<8x256xf32>
    %128 = arith.subf %122, %127 : vector<8x256xf32>
    %129 = arith.mulf %128, %128 : vector<8x256xf32>
    %cst_98 = arith.constant dense<0.000000e+00> : vector<8xf32>
    %130 = vector.multi_reduction <add>, %129, %cst_98 [1] : vector<8x256xf32> to vector<8xf32>
    %131 = vector.shape_cast %130 : vector<8xf32> to vector<8x1xf32>
    %cst_99 = arith.constant 3.906250e-03 : f32
    %132 = vector.broadcast %cst_99 : f32 to vector<8x1xf32>
    %133 = arith.mulf %131, %132 : vector<8x1xf32>
    %c0_100 = arith.constant 0 : index
    %c0_101 = arith.constant 0 : index
    %134 = vector.load %arg7[%c0_100, %c0_101] : memref<8x1xf32, #tpu.memory_space<vmem>>, vector<8x1xf32>
    %cst_102 = arith.constant 9.99999974E-6 : f32
    %135 = vector.broadcast %cst_102 : f32 to vector<8x1xf32>
    %136 = arith.addf %133, %135 : vector<8x1xf32>
    %137 = math.rsqrt %136 : vector<8x1xf32>
    %138 = arith.mulf %134, %137 : vector<8x1xf32>
    %139 = vector.broadcast %138 : vector<8x1xf32> to vector<8x256xf32>
    %140 = arith.mulf %128, %139 : vector<8x256xf32>
    %c0_103 = arith.constant 0 : index
    %c0_104 = arith.constant 0 : index
    %141 = vector.load %arg8[%c0_103, %c0_104] : memref<8x1xf32, #tpu.memory_space<vmem>>, vector<8x1xf32>
    %142 = vector.broadcast %141 : vector<8x1xf32> to vector<8x256xf32>
    %143 = arith.addf %140, %142 : vector<8x256xf32>
    %144 = arith.addf %6, %143 : vector<8x256xf32>
    %c0_105 = arith.constant 0 : index
    %c0_106 = arith.constant 0 : index
    %c0_107 = arith.constant 0 : index
    %145 = vector.load %arg9[%c0_105, %c0_106, %c0_107] : memref<1x8x256xf32, #tpu.memory_space<vmem>>, vector<1x8x256xf32>
    %146 = vector.shape_cast %145 : vector<1x8x256xf32> to vector<8x256xf32>
    %147 = vector.shape_cast %144 : vector<8x256xf32> to vector<1x8x256xf32>
    tpu.vector_store %arg9[%c0_105, %c0_106, %c0_107], %147 {strides = array<i32>} : memref<1x8x256xf32, #tpu.memory_space<vmem>>, vector<1x8x256xf32>,
    return
  }
  func.func @transform_0(%arg0: i32) -> (i32, i32, i32) {
    %c0_i32 = arith.constant 0 : i32
    %c0_i32_0 = arith.constant 0 : i32
    %c0_i32_1 = arith.constant 0 : i32
    return %arg0, %c0_i32, %c0_i32_0 : i32, i32, i32
  }
  func.func @transform_1(%arg0: i32) -> (i32, i32) {
    %c0_i32 = arith.constant 0 : i32
    %c0_i32_0 = arith.constant 0 : i32
    %c0_i32_1 = arith.constant 0 : i32
    return %c0_i32, %c0_i32_0 : i32, i32
  }
  func.func @transform_2(%arg0: i32) -> (i32, i32, i32) {
    %c0_i32 = arith.constant 0 : i32
    %c0_i32_0 = arith.constant 0 : i32
    %c0_i32_1 = arith.constant 0 : i32
    %c0_i32_2 = arith.constant 0 : i32
    return %c0_i32, %c0_i32_0, %c0_i32_1 : i32, i32, i32
  }
  func.func @transform_3(%arg0: i32) -> (i32, i32) {
    %c0_i32 = arith.constant 0 : i32
    %c0_i32_0 = arith.constant 0 : i32
    %c0_i32_1 = arith.constant 0 : i32
    return %c0_i32, %c0_i32_0 : i32, i32
  }
  func.func @transform_4(%arg0: i32) -> (i32, i32) {
    %c0_i32 = arith.constant 0 : i32
    %c0_i32_0 = arith.constant 0 : i32
    %c0_i32_1 = arith.constant 0 : i32
    return %c0_i32, %c0_i32_0 : i32, i32
  }
  func.func @transform_5(%arg0: i32) -> (i32, i32, i32) {
    %c0_i32 = arith.constant 0 : i32
    %c0_i32_0 = arith.constant 0 : i32
    %c0_i32_1 = arith.constant 0 : i32
    %c0_i32_2 = arith.constant 0 : i32
    return %c0_i32, %c0_i32_0, %c0_i32_1 : i32, i32, i32
  }
  func.func @transform_6(%arg0: i32) -> (i32, i32) {
    %c0_i32 = arith.constant 0 : i32
    %c0_i32_0 = arith.constant 0 : i32
    %c0_i32_1 = arith.constant 0 : i32
    return %c0_i32, %c0_i32_0 : i32, i32
  }
  func.func @transform_7(%arg0: i32) -> (i32, i32) {
    %c0_i32 = arith.constant 0 : i32
    %c0_i32_0 = arith.constant 0 : i32
    %c0_i32_1 = arith.constant 0 : i32
    return %c0_i32, %c0_i32_0 : i32, i32
  }
  func.func @transform_8(%arg0: i32) -> (i32, i32, i32) {
    %c0_i32 = arith.constant 0 : i32
    %c0_i32_0 = arith.constant 0 : i32
    %c0_i32_1 = arith.constant 0 : i32
    return %arg0, %c0_i32, %c0_i32_0 : i32, i32, i32
  }
}

</mosaic_0001>

<bundles_post_ra>
// kernel: tpu_custom_call.1
= control target key start
LH: loop header
LB: loop body
LE: loop exit
PB: predicated region body
PF: predicated region fallthrough
CT: control target
= control target key end

     0   :  { %13 = vsyncpa [#allocation4], 0  ;;  %s2566_s0 = inlined_call_operand.vmem [shape: f32[2,8,288], index: 0, kind: input, shape index: {}]   ;;  %s2567_s1 = inlined_call_operand.vmem [shape: f32[2,256], index: 1, kind: input, shape index: {}]   ;;  %s2568_s2 = inlined_call_operand.vmem [shape: f32[9,8,8], index: 2, kind: input, shape index: {}]   ;;  %s2569_s3 = inlined_call_operand.vmem [shape: f32[8,1], index: 3, kind: input, shape index: {}]   ;;  %s2570_s4 = inlined_call_operand.vmem [shape: f32[8,1], index: 4, kind: input, shape index: {}]   ;;  %s2571_s5 = inlined_call_operand.vmem [shape: f32[9,8,8], index: 5, kind: input, shape index: {}]   ;;  %s2572_s6 = inlined_call_operand.vmem [shape: f32[8,1], index: 6, kind: input, shape index: {}]   ;;  %s2573_s7 = inlined_call_operand.vmem [shape: f32[8,1], index: 7, kind: input, shape index: {}]   ;;  %s2574_s8 = inlined_call_operand.hbm [shape: f32[2,8,256], index: 8, kind: output, shape index: {}]  }
   0x1   :  { %15 = vsyncpa [#allocation4 + $0x1], 0  ;;  %s2256_s27 = smov 0   ;;  %s2258_s28 = smov 0  }
   0x2   :  { %s2260_s29 = smov 0   ;;  %s2262_s30 = smov 0  }
   0x3 LB: > { %s2277_s9 = sadd.s32 4294967295, %s2201_s30   ;;  %s2014_s10 = sadd.s32 4294967294, %s2201_s30   ;;  %s2201_s30 = sphi %s2262_s30, %s2580_s30   ;;  %s2197_s29 = sphi %s2260_s29, %s2579_s29   ;;  %s2193_s28 = sphi %s2258_s28, %s2578_s28   ;;  %s2189_s27 = sphi %s2256_s27, %s2577_s27  }
   0x4   : > { %s2281_s11 = sadd.s32 1, %s2201_s30   ;;  %s201_s12 = sadd.s32 1, %s2197_s29 }
   0x5   : > { %s198_s13 = ssub.s32 %s2201_s30, %s2281_s11  ;;  %p211_p0 = scmp.ne.s32.totalorder %s2197_s29, %s2193_s28 }
   0x6   : > { %p199_p1 = scmp.eq.s32.totalorder %s198_s13, 0  ;;  %p212_p2 = scmp.eq.s32.totalorder %s2277_s9, 1 }
   0x7   : > { %p217_p3 = scmp.ne.s32.totalorder %s2193_s28, %s2189_s27  ;;  %p218_p4 = scmp.eq.s32.totalorder %s2014_s10, 1 }
   0x8   : > { %s2292_s14 = scalar_select %p199_p1, %s2197_s29, %s201_s12  }
   0x9   : > { %p2294_p5 = por %p212_p2, %p211_p0  ;;  %p2298_p6 = por %p218_p4, %p217_p3 }
   0xa   : > { %p2017_p7 = scmp.ge.s32.totalorder %s2201_s30, 1  ;;  %p265_p8 = scmp.lt.s32.totalorder %s2201_s30, 3 }
   0xc   : > { %p266_p9 = pnand %p2017_p7, %p265_p8 }
   0xd   : > { %p299_p10 = scmp.lt.s32.totalorder (!%p266_p9), %s2277_s9, 1  ;;  %v2203_v0 = vmov (!%p266_p9), 0.0   ;;  %s2204_s22 = smov (!%p266_p9), 112   ;;  %vm327_vm0 = vcmask (!%p266_p9), 916480   ;;  %v2022_v8 = vld [vmem:[%s2568_s2 + $0x18] sm:$0xff] (!%p266_p9)  ;;  %vm332_vm1 = vcmask (!%p266_p9), 64512   ;;  %v1030_v29 = vlaneseq (!%p266_p9) }
   0xe   : > { %269 = sbr.rel (%p266_p9) target bundleno = 2262 (0x8d6), region = 52  ;;  %400 = vmatprep.mubr.f32.mxu0 (!%p266_p9), %v2203_v0  ;;  %550 = vmatprep.mubr.f32.mxu1 (!%p266_p9), %v2203_v0  ;;  %s2205_s23 = smov (!%p266_p9), 96   ;;  %v2025_v10 = vld [vmem:[%s2568_s2 + $0x20] sm:$0xff] (!%p266_p9)  ;;  %vm789_vm2 = vcmask (!%p266_p9), 785408   ;;  %v2020_v16 = vld [vmem:[%s2568_s2 + $0x8] sm:$0xff] (!%p266_p9)  ;;  %v2033_v19 = vld [vmem:[%s2568_s2 + $0x38] sm:$0xff] (!%p266_p9) }
   0xf   : > { %v311_v14 = vld [vmem:[%s2568_s2] sm:$0xff] (!%p266_p9)  ;;  %v2028_v18 = vld [vmem:[%s2568_s2 + $0x28] sm:$0xff] (!%p266_p9)  ;;  %v2021_v20 = vld [vmem:[%s2568_s2 + $0x10] sm:$0xff] (!%p266_p9)  ;;  %s2207_s19 = smov (!%p266_p9), 127   ;;  %v1038_v30 = vshrl.u32 (!%p266_p9), %v1030_v29, 7  ;;  %v2388_v31 = vand.u32 (!%p266_p9), 127, %v1030_v29 }
  0x10   : > { %v2031_v21 = vld [vmem:[%s2568_s2 + $0x30] sm:$0xff] (!%p266_p9)  ;;  %v2035_v22 = vld [vmem:[%s2568_s2 + $0x40] sm:$0xff] (!%p266_p9)  ;;  %vm304_vm5 = vcmask (!%p266_p9), 130048   ;;  %vm306_vm6 = vcmask (!%p266_p9), 261248   ;;  %vm1118_vm7 = vcmask (!%p266_p9), 1047680   ;;  %v2040_v29 = vld [vmem:[%s2571_s5 + $0x18] sm:$0xff] (!%p266_p9) }
  0x11   : > { %v2390_v32 = vsub.s32 (!%p266_p9), 0, %v1038_v30  ;;  %v2392_v33 = vsub.s32 (!%p266_p9), 1, %v1038_v30  ;;  %v1035_v34 = vld [vmem:[%s2567_s1] ss:$2 sm:$0x3] (!%p266_p9)  ;;  %vm1032_vm3 = vcmp.lt.s32.totalorder (!%p266_p9), %v2388_v31, 1 }
  0x12   : > { %v2037_v38 = vld [vmem:[%s2567_s1 + $0x1] ss:$2 sm:$0x3] (!%p266_p9)  ;;  %vm1053_vm4 = vcmp.lt.s32.totalorder (!%p266_p9), %v2388_v31, 127  ;;  %305 = vst.msk [vmem:[#allocation2] sm:$0xff] (!%p266_p9), %vm304_vm5, %v2203_v0  ;;  %s296_s10 = sand.u32 (!%p266_p9), 1, %s2193_s28  }
  0x13   : > { %v1040_v35 = vrot.slane (!%p266_p9), %v1035_v34, %v2390_v32  ;;  %v1044_v36 = vrot.slane (!%p266_p9), %v1035_v34, %v2392_v33  ;;  %v1062_v44 = vrot.slane (!%p266_p9), %v2037_v38, %v2390_v32  ;;  %v1066_v45 = vrot.slane (!%p266_p9), %v2037_v38, %v2392_v33  ;;  %307 = vst.msk [vmem:[#allocation2 + $0x10] sm:$0xff] (!%p266_p9), %vm306_vm6, %v2203_v0  ;;  %v2046_v34 = vld [vmem:[%s2571_s5 + $0x28] sm:$0xff] (!%p266_p9)  ;;  %v1904_v31 = vld [vmem:[%s2573_s7] sm:$0xff] (!%p266_p9)  ;;  %s2018_s12 = sshll.u32 (!%p266_p9), %s296_s10, 4 }
  0x14   : > { %s298_s13 = scalar_lea.vmem (!%p266_p9), [#allocation3], %s2018_s12 }
  0x15   : > { %s300_s17 = scalar_select %p299_p10, %s2277_s9, 1 }
  0x16   : > { %s1955_s20 = sshll.u32 %s298_s13, 4  ;;  %s2525_s20 = int_to_ptr.vmem [resolvable:$true] %s1955_s20 }
  0x17   : > { %s2086_s18 = smul.u32 24, %s300_s17  ;;  %s2209_s17 = smov 16  }
  0x19   : > { %s303_s21 = scalar_lea.vmem %s2566_s0, %s2086_s18  ;;  %s2206_s18 = smov 1  }
  0x1a   : > { %v2311_v1 = vld [vmem:[%s303_s21 + $0x8] sm:$0xff]  ;;  %v2313_v2 = vld [vmem:[%s303_s21] sm:$0xff]  ;;  %v2319_v3 = vld [vmem:[%s303_s21 + $0x10] sm:$0xff] }
  0x1b   : > { %323 = vrot.lane.b32.xlu0 %v2311_v1, %s2204_s22  ;;  %321 = vrot.lane.b32.xlu1 %v2313_v2, %s2204_s22 }
  0x1f   : > { %325 = vrot.lane.b32.xlu0 %v2319_v3, %s2204_s22  ;;  %785 = vrot.lane.b32.xlu1 %v2311_v1, %s2205_s23 }
  0x23   : > { %787 = vrot.lane.b32.xlu0 %v2319_v3, %s2205_s23  ;;  %783 = vrot.lane.b32.xlu1 %v2313_v2, %s2205_s23 }
  0x8d   : > { %v324_v4 = vpop.permute.xlu0 %323  ;;  %v322_v5 = vpop.permute.xlu1 %321 }
  0x8e   : > { %v328_v9 = vsel %vm327_vm0, %v322_v5, %v324_v4  ;;  %v1098_v5 = vld [vmem:[%s2570_s4] sm:$0xff] }
  0x91   : > { %v326_v6 = vpop.permute.xlu0 %325  ;;  %v786_v11 = vpop.permute.xlu1 %785 }
  0x92   : > { %v329_v7 = vsel %vm327_vm0, %v324_v4, %v326_v6  ;;  %v2208_v4 = vmov 0  }
  0x93   : > { %336 = vmatprep.subr.mxu0 %v329_v7  ;;  %486 = vmatprep.subr.mxu1 %v329_v7 }
  0x94   : > { %337 = vmatpush1.msra.mxu0 %v328_v9  ;;  %487 = vmatpush1.msra.mxu1 %v328_v9 }
  0x95   : > { %2023 = vmatmul.mubr.msk.f32.vlgmr.msra.gmra.mrb[0].mxu0 %vm332_vm1, %v2022_v8  ;;  %410 = vmatprep.subr.mxu0 %v2311_v1  ;;  %v788_v12 = vpop.permute.xlu0 %787  ;;  %v784_v15 = vpop.permute.xlu1 %783 }
  0x96   : > { %411 = vmatpush1.msra.mxu0 %v2313_v2  ;;  %474 = vmatprep.mubr.f32.mxu0 %v2203_v0  ;;  %v791_v13 = vsel %vm789_vm2, %v786_v11, %v788_v12  ;;  %v790_v17 = vsel %vm789_vm2, %v784_v15, %v786_v11 }
  0x97   : > { %636 = vmatprep.subr.mxu0 %v329_v7  ;;  %2026 = vmatmul.mubr.msk.f32.vlgmr.msra.gmra.mrb[0].mxu1 %vm332_vm1, %v2025_v10 }
  0x98   : > { %560 = vmatprep.subr.mxu1 %v2311_v1  ;;  %624 = vmatprep.mubr.f32.mxu1 %v2203_v0 }
  0x99   : > { %561 = vmatpush1.msra.mxu1 %v2313_v2  ;;  %2133 = vset.pattern.permute.xlu0 %v2208_v4 }
  0x9a   : > { %875 = vmatprep.subr.mxu1 %v791_v13  ;;  %2134 = vset.pattern.permute.xlu1 %v2208_v4 }
  0x9d   : > { %2024 = vmatmul.mubr.msk.f32.vlgmr.msra.gmra.mrb[0].mxu0 %vm332_vm1, %v311_v14 }
  0x9e   : > { %637 = vmatpush1.msra.mxu0 %v328_v9  ;;  %700 = vmatprep.mubr.f32.mxu0 %v2203_v0  ;;  %v1087_v9 = vld [vmem:[%s2569_s3] sm:$0xff] }
  0x9f   : > { %710 = vmatprep.subr.mxu0 %v2311_v1  ;;  %2027 = vmatmul.mubr.msk.f32.vlgmr.msra.gmra.mrb[0].mxu1 %vm332_vm1, %v2020_v16 }
  0xa0   : > { %876 = vmatpush1.msra.mxu1 %v790_v17  ;;  %939 = vmatprep.mubr.f32.mxu1 %v2203_v0 }
  0xa1   : > { %2029 = vmatmul.mubr.msk.f32.vlgmr.msra.gmra.mrb[2].mxu0 %vm332_vm1, %v2028_v18 }
  0xa2   : > { %711 = vmatpush1.msra.mxu0 %v2313_v2  ;;  %774 = vmatprep.mubr.f32.mxu0 %v2203_v0 }
  0xa3   : > { %797 = vmatprep.subr.mxu0 %v791_v13 }
  0xa7   : > { %2034 = vmatmul.mubr.msk.f32.vlgmr.msra.gmra.mrb[0].mxu1 %vm332_vm1, %v2033_v19 }
  0xa8   : > { %1212 = vmatprep.mubr.f32.mxu1 %v2203_v0 }
  0xa9   : > { %2030 = vmatmul.mubr.msk.f32.vlgmr.msra.gmra.mrb[2].mxu0 %vm332_vm1, %v2021_v20 }
  0xaa   : > { %798 = vmatpush1.msra.mxu0 %v790_v17  ;;  %861 = vmatprep.mubr.f32.mxu0 %v2203_v0 }
  0xab   : > { %953 = vmatprep.subr.mxu0 %v791_v13 }
  0xad   : > { %2032 = vmatmul.mubr.msk.f32.vlgmr.msra.gmra.mrb[0].mxu0 %vm332_vm1, %v2031_v21 }
  0xae   : > { %954 = vmatpush1.msra.mxu0 %v790_v17  ;;  %1017 = vmatprep.mubr.f32.mxu0 %v2203_v0 }
  0xb1   : > { %2036 = vmatmul.mubr.msk.f32.vlgmr.msra.gmra.mrb[2].mxu0 %vm332_vm1, %v2035_v22 }
  0xb2   : > { %1512 = vmatprep.mubr.f32.mxu0 %v2203_v0 }
 0x17a   : > { %v941_v23 = vpop.f32.mrb[0].mxu1 }
 0x17b   : > { %v943_v24 = vpop.f32.mrb[1].mxu1 }
 0x180   : > { %v863_v25 = vpop.f32.mrb[0].mxu0 }
 0x181   : > { %1026 = vrot.lane.b32.xlu0 %v863_v25, %s2206_s18  ;;  %v865_v26 = vpop.f32.mrb[1].mxu0 }
 0x182   : > { %1028 = vrot.lane.b32.xlu1 %v865_v26, %s2206_s18 }
 0x184   : > { %v1019_v27 = vpop.f32.mrb[2].mxu0 }
 0x185   : > { %1049 = vrot.lane.b32.xlu0 %v1019_v27, %s2207_s19  ;;  %v1021_v28 = vpop.f32.mrb[3].mxu0 }
 0x186   : > { %1051 = vrot.lane.b32.xlu1 %v1021_v28, %s2207_s19 }
 0x1f3   : > { %v1027_v37 = vpop.permute.xlu0 %1026 }
 0x1f4   : > { %v1029_v39 = vpop.permute.xlu1 %1028 }
 0x1f5   : > { %v1033_v40 = vsel %vm1032_vm3, %v1027_v37, %v1029_v39  ;;  %v1034_v41 = vsel %vm1032_vm3, %v1029_v39, %v1027_v37  ;;  %v1124_v39 = vld [vmem:[%s2571_s5] sm:$0xff] }
 0x1f6   : > { %v1047_v42 = vmul.f32 %v1040_v35, %v1034_v41  ;;  %v1048_v43 = vmul.f32 %v1044_v36, %v1033_v40  ;;  %v2039_v40 = vld [vmem:[%s2571_s5 + $0x10] sm:$0xff] }
 0x1f7   : > { %v1050_v46 = vpop.permute.xlu0 %1049 }
 0x1f8   : > { %v1052_v47 = vpop.permute.xlu1 %1051  ;;  %v1071_v50 = vadd.f32 %v1047_v42, %v941_v23  ;;  %v1072_v51 = vadd.f32 %v1048_v43, %v943_v24  ;;  %v2043_v42 = vld [vmem:[%s2571_s5 + $0x20] sm:$0xff] }
 0x1f9   : > { %v1054_v48 = vsel %vm1053_vm4, %v1050_v46, %v1052_v47  ;;  %v1055_v49 = vsel %vm1053_vm4, %v1052_v47, %v1050_v46  ;;  %v2053_v43 = vld [vmem:[%s2571_s5 + $0x40] sm:$0xff]  ;;  %v2051_v46 = vld [vmem:[%s2571_s5 + $0x38] sm:$0xff] }
 0x1fa   : > { %v1069_v52 = vmul.f32 %v1062_v44, %v1054_v48  ;;  %v1070_v53 = vmul.f32 %v1066_v45, %v1055_v49  ;;  %v2038_v44 = vld [vmem:[%s2571_s5 + $0x8] sm:$0xff]  ;;  %v2049_v45 = vld [vmem:[%s2571_s5 + $0x30] sm:$0xff] }
 0x1fc   : > { %v1073_v54 = vadd.f32 %v1071_v50, %v1069_v52  ;;  %v1074_v55 = vadd.f32 %v1072_v51, %v1070_v53 }
 0x1fe   : > { %v1075_v56 = vadd.f32 %v1074_v55, %v1073_v54 }
 0x200   : > { %1076 = vadd.xlane.f32.xlu0 %v1075_v56  ;;  %v2055_v56 = vld [vmem:[%s2567_s1 + $0x1] ss:$2 sm:$0x3] }
 0x28d   : > { %v1077_v57 = vpop.xlane.xlu0 %1076 }
 0x28e   : > { %v1078_v58 = vmul.f32 0.00390625, %v1077_v57 }
 0x290   : > { %v1079_v59 = vsub.f32 %v1073_v54, %v1078_v58  ;;  %v1080_v60 = vsub.f32 %v1074_v55, %v1078_v58 }
 0x292   : > { %v1081_v61 = vmul.f32 %v1079_v59, %v1079_v59  ;;  %v1082_v62 = vmul.f32 %v1080_v60, %v1080_v60 }
 0x294   : > { %v1083_v63 = vadd.f32 %v1082_v62, %v1081_v61  ;;  %v1868_v62 = vrot.slane %v2055_v56, %v2390_v32 }
 0x296   : > { %1084 = vadd.xlane.f32.xlu1 %v1083_v63  ;;  %v1872_v63 = vrot.slane %v2055_v56, %v2392_v33 }
 0x2a7   : > { %1101 = vperm.xlu1 %2134, %v1098_v5  }
 0x323   : > { %v1085_v6 = vpop.xlane.xlu1 %1084 }
 0x324   : > { %v1086_v7 = vmul.f32 0.00390625, %v1085_v6 }
 0x326   : > { %v1088_v8 = vadd.f32 1e-05, %v1086_v7 }
 0x327   : > { %v1102_v13 = vpop.permute.xlu1 %1101 }
 0x328   : > { %2135 = vrsqrt.f32 %v1088_v8 }
 0x332   : > { %v2136_v10 = vpop.eup %2135 }
 0x333   : > { %v1090_v11 = vmul.f32 %v2136_v10, %v1087_v9 }
 0x335   : > { %1093 = vperm.xlu0 %2133, %v1090_v11  }
 0x3b4   : > { %v1094_v12 = vpop.permute.xlu0 %1093 }
 0x3b5   : > { %v1096_v14 = vmul.f32 %v1094_v12, %v1079_v59  ;;  %v1097_v15 = vmul.f32 %v1094_v12, %v1080_v60 }
 0x3b7   : > { %v1104_v16 = vadd.f32 %v1102_v13, %v1096_v14  ;;  %v1105_v17 = vadd.f32 %v1102_v13, %v1097_v15 }
 0x3b9   : > { %v1106_v18 = vmax.f32 %v1104_v16, 0.0  ;;  %v1107_v19 = vmax.f32 %v1105_v17, 0.0 }
 0x3bb   : > { %1110 = vrot.lane.b32.xlu1 %v1106_v18, %s2209_s17 }
 0x3bf   : > { %1112 = vrot.lane.b32.xlu1 %v1107_v19, %s2209_s17 }
 0x42d   : > { %v1111_v20 = vpop.permute.xlu1 %1110 }
 0x42e   : > { %1119 = vst.msk [vmem:[#allocation2] sm:$0xff] %vm1118_vm7, %v1111_v20 }
 0x431   : > { %v1113_v21 = vpop.permute.xlu1 %1112 }
 0x432   : > { %v1114_v22 = vsel %vm304_vm5, %v1111_v20, %v1113_v21  ;;  %1121 = vst.msk [vmem:[#allocation2 + $0x10] sm:$0xff] %vm304_vm5, %v1113_v21 }
 0x435   : > { %v1122_v24 = vld [vmem:[#allocation2] sm:$0xff] }
 0x439   : > { %v1129_v23 = vld [vmem:[#allocation2 + $0x10] sm:$0xff] }
 0x43a   : > { %1599 = vrot.lane.b32.xlu0 %v1129_v23, %s2205_s23  ;;  %1139 = vrot.lane.b32.xlu1 %v1129_v23, %s2204_s22  ;;  %v1893_v23 = vld [vmem:[%s2572_s6] sm:$0xff] }
 0x43e   : > { %1137 = vrot.lane.b32.xlu1 %v1114_v22, %s2204_s22 }
 0x442   : > { %1135 = vrot.lane.b32.xlu1 %v1122_v24, %s2204_s22 }
 0x446   : > { %1597 = vrot.lane.b32.xlu1 %v1114_v22, %s2205_s23 }
 0x44a   : > { %1595 = vrot.lane.b32.xlu1 %v1122_v24, %s2205_s23 }
 0x4ac   : > { %v1140_v25 = vpop.permute.xlu1 %1139  ;;  %v1600_v35 = vpop.permute.xlu0 %1599 }
 0x4b0   : > { %v1138_v26 = vpop.permute.xlu1 %1137 }
 0x4b1   : > { %v1142_v27 = vsel %vm327_vm0, %v1138_v26, %v1140_v25 }
 0x4b2   : > { %1148 = vmatprep.subr.mxu1 %v1142_v27  ;;  %1448 = vmatprep.subr.mxu0 %v1142_v27 }
 0x4b4   : > { %v1136_v28 = vpop.permute.xlu1 %1135 }
 0x4b5   : > { %v1141_v30 = vsel %vm327_vm0, %v1136_v28, %v1138_v26 }
 0x4b6   : > { %1149 = vmatpush1.msra.mxu1 %v1141_v30  ;;  %1449 = vmatpush1.msra.mxu0 %v1141_v30 }
 0x4b7   : > { %2041 = vmatmul.mubr.msk.f32.vlgmr.msra.gmra.mrb[2].mxu1 %vm332_vm1, %v2040_v29  ;;  %1222 = vmatprep.subr.mxu1 %v1114_v22 }
 0x4b8   : > { %2047 = vmatmul.mubr.msk.f32.vlgmr.msra.gmra.mrb[4].mxu0 %vm332_vm1, %v2046_v34  ;;  %1522 = vmatprep.subr.mxu0 %v1114_v22  ;;  %v1598_v36 = vpop.permute.xlu1 %1597 }
 0x4b9   : > { %1223 = vmatpush1.msra.mxu1 %v1122_v24  ;;  %1523 = vmatpush1.msra.mxu0 %v1122_v24  ;;  %v1602_v37 = vsel %vm789_vm2, %v1598_v36, %v1600_v35 }
 0x4ba   : > { %1298 = vmatprep.subr.mxu1 %v1142_v27  ;;  %1764 = vmatprep.subr.mxu0 %v1602_v37 }
 0x4bb   : > { %1286 = vmatprep.mubr.f32.mxu1 %v2203_v0  ;;  %1586 = vmatprep.mubr.f32.mxu0 %v2203_v0 }
 0x4bc   : > { %v1596_v38 = vpop.permute.xlu1 %1595 }
 0x4bd   : > { %v1601_v41 = vsel %vm789_vm2, %v1596_v38, %v1598_v36 }
 0x4bf   : > { %2042 = vmatmul.mubr.msk.f32.vlgmr.msra.gmra.mrb[2].mxu1 %vm332_vm1, %v1124_v39 }
 0x4c0   : > { %1299 = vmatpush1.msra.mxu1 %v1141_v30  ;;  %2048 = vmatmul.mubr.msk.f32.vlgmr.msra.gmra.mrb[4].mxu0 %vm332_vm1, %v2039_v40 }
 0x4c1   : > { %1765 = vmatpush1.msra.mxu0 %v1601_v41  ;;  %1372 = vmatprep.subr.mxu1 %v1114_v22 }
 0x4c2   : > { %1362 = vmatprep.mubr.f32.mxu1 %v2203_v0  ;;  %1828 = vmatprep.mubr.f32.mxu0 %v2203_v0 }
 0x4c3   : > { %2044 = vmatmul.mubr.msk.f32.vlgmr.msra.gmra.mrb[4].mxu1 %vm332_vm1, %v2043_v42 }
 0x4c4   : > { %1373 = vmatpush1.msra.mxu1 %v1122_v24  ;;  %1436 = vmatprep.mubr.f32.mxu1 %v2203_v0 }
 0x4c5   : > { %1608 = vmatprep.subr.mxu1 %v1602_v37 }
 0x4c8   : > { %2054 = vmatmul.mubr.msk.f32.vlgmr.msra.gmra.mrb[4].mxu0 %vm332_vm1, %v2053_v43 }
 0x4cb   : > { %2045 = vmatmul.mubr.msk.f32.vlgmr.msra.gmra.mrb[4].mxu1 %vm332_vm1, %v2038_v44 }
 0x4cc   : > { %1609 = vmatpush1.msra.mxu1 %v1601_v41  ;;  %1672 = vmatprep.mubr.f32.mxu1 %v2203_v0 }
 0x4cd   : > { %1686 = vmatprep.subr.mxu1 %v1602_v37 }
 0x4cf   : > { %2050 = vmatmul.mubr.msk.f32.vlgmr.msra.gmra.mrb[2].mxu1 %vm332_vm1, %v2049_v45 }
 0x4d0   : > { %1687 = vmatpush1.msra.mxu1 %v1601_v41  ;;  %1750 = vmatprep.mubr.f32.mxu1 %v2203_v0  ;;  %v1843_v0 = vld [vmem:[%s2567_s1] ss:$2 sm:$0x3] }
 0x4d1   : > { %v1848_v53 = vrot.slane %v1843_v0, %v2390_v32  ;;  %v1852_v54 = vrot.slane %v1843_v0, %v2392_v33 }
 0x4d3   : > { %2052 = vmatmul.mubr.msk.f32.vlgmr.msra.gmra.mrb[4].mxu1 %vm332_vm1, %v2051_v46 }
 0x59b   : > { %v1830_v47 = vpop.f32.mrb[4].mxu0 }
 0x59c   : > { %v1832_v48 = vpop.f32.mrb[5].mxu0 }
 0x5a2   : > { %v1674_v49 = vpop.f32.mrb[2].mxu1 }
 0x5a3   : > { %1837 = vrot.lane.b32.xlu0 %v1674_v49, %s2206_s18  ;;  %v1676_v50 = vpop.f32.mrb[3].mxu1 }
 0x5a4   : > { %1839 = vrot.lane.b32.xlu1 %v1676_v50, %s2206_s18  ;;  %s2210_s18 = smov [#allocation3]  }
 0x5a6   : > { %v1752_v51 = vpop.f32.mrb[4].mxu1 }
 0x5a7   : > { %1857 = vrot.lane.b32.xlu0 %v1830_v47, %s2207_s19  ;;  %v1754_v52 = vpop.f32.mrb[5].mxu1 }
 0x5a8   : > { %1859 = vrot.lane.b32.xlu1 %v1832_v48, %s2207_s19  ;;  %s2143_s19 = sshll.u32 %s2210_s18, 4  ;;  %s2144_s19 = int_to_ptr.vmem [resolvable:$false] %s2143_s19 }
 0x5a9   : > { %s2145_s23 = scalar_lea.vmem %s2144_s19, 512  ;;  %p2146_p0 = scmp.lt.s32.totalorder %s2525_s20, %s2144_s19 }
 0x615   : > { %v1838_v55 = vpop.permute.xlu0 %1837 }
 0x616   : > { %v1840_v57 = vpop.permute.xlu1 %1839 }
 0x617   : > { %v1841_v58 = vsel %vm1032_vm3, %v1838_v55, %v1840_v57  ;;  %v1842_v59 = vsel %vm1032_vm3, %v1840_v57, %v1838_v55 }
 0x618   : > { %v1855_v60 = vmul.f32 %v1848_v53, %v1842_v59  ;;  %v1856_v61 = vmul.f32 %v1852_v54, %v1841_v58 }
 0x619   : > { %v1858_v4 = vpop.permute.xlu0 %1857 }
 0x61a   : > { %v1860_v5 = vpop.permute.xlu1 %1859  ;;  %v1877_v8 = vadd.f32 %v1855_v60, %v1752_v51  ;;  %v1878_v9 = vadd.f32 %v1856_v61, %v1754_v52 }
 0x61b   : > { %v1861_v6 = vsel %vm1053_vm4, %v1858_v4, %v1860_v5  ;;  %v1862_v7 = vsel %vm1053_vm4, %v1860_v5, %v1858_v4 }
 0x61c   : > { %v1875_v10 = vmul.f32 %v1868_v62, %v1861_v6  ;;  %v1876_v11 = vmul.f32 %v1872_v63, %v1862_v7 }
 0x61e   : > { %v1879_v12 = vadd.f32 %v1877_v8, %v1875_v10  ;;  %v1880_v13 = vadd.f32 %v1878_v9, %v1876_v11 }
 0x620   : > { %v1881_v14 = vadd.f32 %v1880_v13, %v1879_v12 }
 0x622   : > { %1882 = vadd.xlane.f32.xlu0 %v1881_v14 }
 0x6af   : > { %v1883_v15 = vpop.xlane.xlu0 %1882 }
 0x6b0   : > { %v1884_v32 = vmul.f32 0.00390625, %v1883_v15 }
 0x6b2   : > { %v1885_v16 = vsub.f32 %v1879_v12, %v1884_v32  ;;  %v1886_v33 = vsub.f32 %v1880_v13, %v1884_v32 }
 0x6b4   : > { %v1887_v17 = vmul.f32 %v1885_v16, %v1885_v16  ;;  %v1888_v18 = vmul.f32 %v1886_v33, %v1886_v33 }
 0x6b6   : > { %v1889_v19 = vadd.f32 %v1888_v18, %v1887_v17 }
 0x6b8   : > { %1890 = vadd.xlane.f32.xlu1 %v1889_v19 }
 0x6c9   : > { %1907 = vperm.xlu1 %2134, %v1904_v31  }
 0x745   : > { %v1891_v20 = vpop.xlane.xlu1 %1890 }
 0x746   : > { %v1892_v21 = vmul.f32 0.00390625, %v1891_v20 }
 0x748   : > { %v1894_v22 = vadd.f32 1e-05, %v1892_v21 }
 0x749   : > { %v1908_v29 = vpop.permute.xlu1 %1907 }
 0x74a   : > { %2137 = vrsqrt.f32 %v1894_v22 }
 0x754   : > { %v2138_v24 = vpop.eup %2137 }
 0x755   : > { %v1896_v25 = vmul.f32 %v2138_v24, %v1893_v23 }
 0x757   : > { %1899 = vperm.xlu0 %2133, %v1896_v25  }
 0x7d6   : > { %v1900_v26 = vpop.permute.xlu0 %1899 }
 0x7d7   : > { %v1902_v27 = vmul.f32 %v1900_v26, %v1885_v16  ;;  %v1903_v28 = vmul.f32 %v1900_v26, %v1886_v33 }
 0x7d9   : > { %v1910_v30 = vadd.f32 %v1908_v29, %v1902_v27  ;;  %v1911_v34 = vadd.f32 %v1908_v29, %v1903_v28 }
 0x7db   : > { %1916 = vrot.lane.b32.xlu1 %v1911_v34, %s2209_s17  ;;  %1914 = vrot.lane.b32.xlu0 %v1910_v30, %s2209_s17  ;;  %s2061_s17 = sshll.u32 %s2277_s9, 8  ;;  %s1941_s9 = scalar_lea.sflag [#allocation4], %s296_s10 }
 0x7dc   : > { %s2523_s25 = scalar_lea.hbm %s2574_s8, %s2061_s17 }
 0x84d   : > { %v1917_v35 = vpop.permute.xlu1 %1916  ;;  %v1915_v36 = vpop.permute.xlu0 %1914 }
 0x84e   : > { %v1918_v37 = vsel %vm304_vm5, %v1915_v36, %v1917_v35  ;;  %v1922_v38 = vadd.f32 %v1915_v36, %v2313_v2  ;;  %v1924_v40 = vadd.f32 %v1917_v35, %v2319_v3 }
 0x84f   : > { %v1923_v39 = vadd.f32 %v1918_v37, %v2311_v1 }
 0x850   : > { %1928 = vrot.lane.b32.xlu0 %v1922_v38, %s2204_s22 }
 0x851   : > { %1930 = vrot.lane.b32.xlu1 %v1923_v39, %s2204_s22 }
 0x854   : > { %1932 = vrot.lane.b32.xlu0 %v1924_v40, %s2204_s22  ;;  %s2139_s22 = scalar_lea.vmem %s2525_s20, 256 }
 0x855   : > { %p2140_p11 = scmp.ne.s32.totalorder %s2525_s20, %s2139_s22  ;;  %p2147_p1 = scmp.lt.s32.totalorder %s2145_s23, %s2139_s22 }
 0x857   : > { %p2141_p12 = pnand %p2140_p11, %p2294_p5  ;;  %p2148_p2 = por %p2147_p1, %p2146_p0 }
 0x859   : > { %p2142_p13 = pneg %p2141_p12 }
 0x85b   : > { %p2149_p3 = pnand %p2148_p2, %p2142_p13 }
 0x8c2   : > { %v1929_v41 = vpop.permute.xlu0 %1928 }
 0x8c3   : > { %v1931_v42 = vpop.permute.xlu1 %1930 }
 0x8c4   : > { %v1934_v2 = vsel %vm327_vm0, %v1929_v41, %v1931_v42 }
 0x8c5   : > { %1938 = vst [vmem:[%s298_s13] sm:$0xff] %v1934_v2 }
 0x8c6   : > { %v1933_v1 = vpop.permute.xlu0 %1932 }
 0x8c7   : > { %v1935_v3 = vsel %vm327_vm0, %v1931_v42, %v1933_v1 }
 0x8c8   : > { %1939 = vst [vmem:[%s298_s13 + $0x8] sm:$0xff] %v1935_v3 }
 0x8c9   : > { %2152 = shalt.err (!%p2149_p3)
}
 0x8ca   : > { %s2153_s26 = scalar_lea.hbm %s2523_s25, 256  ;;  %s2157_s17 = scalar_lea.hbm %s2574_s8, 512 }
 0x8cb   : > { %p2154_p4 = scmp.ne.s32.totalorder %s2523_s25, %s2153_s26  ;;  %p2158_p9 = scmp.lt.u32.totalorder %s2523_s25, %s2574_s8 }
 0x8cc   : > { %p2159_p10 = scmp.lt.u32.totalorder %s2157_s17, %s2153_s26  ;;  %p2161_p12 = scmp.lt.u32.totalorder %s2153_s26, %s2523_s25 }
 0x8cd   : > { %p2155_p7 = pnand %p2154_p4, %p2294_p5 }
 0x8ce   : > { %p2160_p11 = por %p2159_p10, %p2158_p9 }
 0x8cf   : > { %p2156_p8 = pneg %p2155_p7 }
 0x8d0   : > { %p2162_p13 = por %p2161_p12, %p2160_p11 }
 0x8d2   : > { %p2163_p0 = pnand %p2162_p13, %p2156_p8 }
 0x8d4   : > { %2166 = shalt.err (!%p2163_p0)
}
 0x8d5   : > { %2087 = dma.vmem_to_hbm [thread:$0]  (%p2294_p5), %s2525_s20, 256, %s2523_s25, %s1941_s9  }
 0x8d6 PF: > { %p2093_p1 = scmp.ge.s32.totalorder %s2201_s30, 2  ;;  %s1967_s24 = sand.u32 1, %s2189_s27  }
 0x8d7   : > { %s1968_s22 = scalar_lea.sflag [#allocation4], %s1967_s24 }
 0x8d8   : > { %p2090_p2 = pnand %p2093_p1, %p2298_p6 }
 0x8da   : > { %2184 = dma.done.wait (!%p2090_p2), %s1968_s22, 256  }
 0x8db   : > { %2186 = vsyncadd (!%p2090_p2), %s1968_s22, 4294967040  ;;  %p18_p3 = scmp.ge.s32.totalorder %s2281_s11, 4   ;;  %s2577_s27 = smov %s2193_s28 }
 0x8dc   : > { %s2578_s28 = smov %s2197_s29  ;;  %s2579_s29 = smov %s2292_s14 }
 0x8dd   : > { %s2580_s30 = smov %s2281_s11  ;;  %20 = sbr.rel (!%p18_p3) target bundleno = 3 (0x3), region = 104 }
 0x8e4   :  { %1973 = vsyncpa [#allocation4], 1 }
 0x8e5   :  { %1975 = vsyncpa [#allocation4 + $0x1], 1 }

// kernel: tpu_custom_call.1
= control target key start
LH: loop header
LB: loop body
LE: loop exit
PB: predicated region body
PF: predicated region fallthrough
CT: control target
= control target key end

     0   :  { %13 = vsyncpa [#allocation4], 0  ;;  %s2566_s0 = inlined_call_operand.vmem [shape: f32[2,8,288], index: 0, kind: input, shape index: {}]   ;;  %s2567_s1 = inlined_call_operand.vmem [shape: f32[2,256], index: 1, kind: input, shape index: {}]   ;;  %s2568_s2 = inlined_call_operand.vmem [shape: f32[9,8,8], index: 2, kind: input, shape index: {}]   ;;  %s2569_s3 = inlined_call_operand.vmem [shape: f32[8,1], index: 3, kind: input, shape index: {}]   ;;  %s2570_s4 = inlined_call_operand.vmem [shape: f32[8,1], index: 4, kind: input, shape index: {}]   ;;  %s2571_s5 = inlined_call_operand.vmem [shape: f32[9,8,8], index: 5, kind: input, shape index: {}]   ;;  %s2572_s6 = inlined_call_operand.vmem [shape: f32[8,1], index: 6, kind: input, shape index: {}]   ;;  %s2573_s7 = inlined_call_operand.vmem [shape: f32[8,1], index: 7, kind: input, shape index: {}]   ;;  %s2574_s8 = inlined_call_operand.hbm [shape: f32[2,8,256], index: 8, kind: output, shape index: {}]  }
   0x1   :  { %15 = vsyncpa [#allocation4 + $0x1], 0  ;;  %s2256_s27 = smov 0   ;;  %s2258_s28 = smov 0  }
   0x2   :  { %s2260_s29 = smov 0   ;;  %s2262_s30 = smov 0  }
   0x3 LB: > { %s2277_s9 = sadd.s32 4294967295, %s2201_s30   ;;  %s2014_s10 = sadd.s32 4294967294, %s2201_s30   ;;  %s2201_s30 = sphi %s2262_s30, %s2580_s30   ;;  %s2197_s29 = sphi %s2260_s29, %s2579_s29   ;;  %s2193_s28 = sphi %s2258_s28, %s2578_s28   ;;  %s2189_s27 = sphi %s2256_s27, %s2577_s27  }
   0x4   : > { %s2281_s11 = sadd.s32 1, %s2201_s30   ;;  %s201_s12 = sadd.s32 1, %s2197_s29 }
   0x5   : > { %s198_s13 = ssub.s32 %s2201_s30, %s2281_s11  ;;  %p211_p0 = scmp.ne.s32.totalorder %s2197_s29, %s2193_s28 }
   0x6   : > { %p199_p1 = scmp.eq.s32.totalorder %s198_s13, 0  ;;  %p212_p2 = scmp.eq.s32.totalorder %s2277_s9, 1 }
   0x7   : > { %p217_p3 = scmp.ne.s32.totalorder %s2193_s28, %s2189_s27  ;;  %p218_p4 = scmp.eq.s32.totalorder %s2014_s10, 1 }
   0x8   : > { %s2292_s14 = scalar_select %p199_p1, %s2197_s29, %s201_s12  }
   0x9   : > { %p2294_p5 = por %p212_p2, %p211_p0  ;;  %p2298_p6 = por %p218_p4, %p217_p3 }
   0xa   : > { %p2017_p7 = scmp.ge.s32.totalorder %s2201_s30, 1  ;;  %p265_p8 = scmp.lt.s32.totalorder %s2201_s30, 3 }
   0xc   : > { %p266_p9 = pnand %p2017_p7, %p265_p8 }
   0xd   : > { %p299_p10 = scmp.lt.s32.totalorder (!%p266_p9), %s2277_s9, 1  ;;  %v2203_v0 = vmov (!%p266_p9), 0.0   ;;  %s2204_s22 = smov (!%p266_p9), 112   ;;  %vm327_vm0 = vcmask (!%p266_p9), 916480   ;;  %v2022_v8 = vld [vmem:[%s2568_s2 + $0x18] sm:$0xff] (!%p266_p9)  ;;  %vm332_vm1 = vcmask (!%p266_p9), 64512   ;;  %v1030_v29 = vlaneseq (!%p266_p9) }
   0xe   : > { %269 = sbr.rel (%p266_p9) target bundleno = 2262 (0x8d6), region = 52  ;;  %400 = vmatprep.mubr.f32.mxu0 (!%p266_p9), %v2203_v0  ;;  %550 = vmatprep.mubr.f32.mxu1 (!%p266_p9), %v2203_v0  ;;  %s2205_s23 = smov (!%p266_p9), 96   ;;  %v2025_v10 = vld [vmem:[%s2568_s2 + $0x20] sm:$0xff] (!%p266_p9)  ;;  %vm789_vm2 = vcmask (!%p266_p9), 785408   ;;  %v2020_v16 = vld [vmem:[%s2568_s2 + $0x8] sm:$0xff] (!%p266_p9)  ;;  %v2033_v19 = vld [vmem:[%s2568_s2 + $0x38] sm:$0xff] (!%p266_p9) }
   0xf   : > { %v311_v14 = vld [vmem:[%s2568_s2] sm:$0xff] (!%p266_p9)  ;;  %v2028_v18 = vld [vmem:[%s2568_s2 + $0x28] sm:$0xff] (!%p266_p9)  ;;  %v2021_v20 = vld [vmem:[%s2568_s2 + $0x10] sm:$0xff] (!%p266_p9)  ;;  %s2207_s19 = smov (!%p266_p9), 127   ;;  %v1038_v30 = vshrl.u32 (!%p266_p9), %v1030_v29, 7  ;;  %v2388_v31 = vand.u32 (!%p266_p9), 127, %v1030_v29 }
  0x10   : > { %v2031_v21 = vld [vmem:[%s2568_s2 + $0x30] sm:$0xff] (!%p266_p9)  ;;  %v2035_v22 = vld [vmem:[%s2568_s2 + $0x40] sm:$0xff] (!%p266_p9)  ;;  %vm304_vm5 = vcmask (!%p266_p9), 130048   ;;  %vm306_vm6 = vcmask (!%p266_p9), 261248   ;;  %vm1118_vm7 = vcmask (!%p266_p9), 1047680   ;;  %v2040_v29 = vld [vmem:[%s2571_s5 + $0x18] sm:$0xff] (!%p266_p9) }
  0x11   : > { %v2390_v32 = vsub.s32 (!%p266_p9), 0, %v1038_v30  ;;  %v2392_v33 = vsub.s32 (!%p266_p9), 1, %v1038_v30  ;;  %v1035_v34 = vld [vmem:[%s2567_s1] ss:$2 sm:$0x3] (!%p266_p9)  ;;  %vm1032_vm3 = vcmp.lt.s32.totalorder (!%p266_p9), %v2388_v31, 1 }
  0x12   : > { %v2037_v38 = vld [vmem:[%s2567_s1 + $0x1] ss:$2 sm:$0x3] (!%p266_p9)  ;;  %vm1053_vm4 = vcmp.lt.s32.totalorder (!%p266_p9), %v2388_v31, 127  ;;  %305 = vst.msk [vmem:[#allocation2] sm:$0xff] (!%p266_p9), %vm304_vm5, %v2203_v0  ;;  %s296_s10 = sand.u32 (!%p266_p9), 1, %s2193_s28  }
  0x13   : > { %v1040_v35 = vrot.slane (!%p266_p9), %v1035_v34, %v2390_v32  ;;  %v1044_v36 = vrot.slane (!%p266_p9), %v1035_v34, %v2392_v33  ;;  %v1062_v44 = vrot.slane (!%p266_p9), %v2037_v38, %v2390_v32  ;;  %v1066_v45 = vrot.slane (!%p266_p9), %v2037_v38, %v2392_v33  ;;  %307 = vst.msk [vmem:[#allocation2 + $0x10] sm:$0xff] (!%p266_p9), %vm306_vm6, %v2203_v0  ;;  %v2046_v34 = vld [vmem:[%s2571_s5 + $0x28] sm:$0xff] (!%p266_p9)  ;;  %v1904_v31 = vld [vmem:[%s2573_s7] sm:$0xff] (!%p266_p9)  ;;  %s2018_s12 = sshll.u32 (!%p266_p9), %s296_s10, 4 }
  0x14   : > { %s298_s13 = scalar_lea.vmem (!%p266_p9), [#allocation3], %s2018_s12 }
  0x15   : > { %s300_s17 = scalar_select %p299_p10, %s2277_s9, 1 }
  0x16   : > { %s1955_s20 = sshll.u32 %s298_s13, 4  ;;  %s2525_s20 = int_to_ptr.vmem [resolvable:$true] %s1955_s20 }
  0x17   : > { %s2086_s18 = smul.u32 24, %s300_s17  ;;  %s2209_s17 = smov 16  }
  0x19   : > { %s303_s21 = scalar_lea.vmem %s2566_s0, %s2086_s18  ;;  %s2206_s18 = smov 1  }
  0x1a   : > { %v2311_v1 = vld [vmem:[%s303_s21 + $0x8] sm:$0xff]  ;;  %v2313_v2 = vld [vmem:[%s303_s21] sm:$0xff]  ;;  %v2319_v3 = vld [vmem:[%s303_s21 + $0x10] sm:$0xff] }
  0x1b   : > { %323 = vrot.lane.b32.xlu0 %v2311_v1, %s2204_s22  ;;  %321 = vrot.lane.b32.xlu1 %v2313_v2, %s2204_s22 }
  0x1f   : > { %325 = vrot.lane.b32.xlu0 %v2319_v3, %s2204_s22  ;;  %785 = vrot.lane.b32.xlu1 %v2311_v1, %s2205_s23 }
  0x23   : > { %787 = vrot.lane.b32.xlu0 %v2319_v3, %s2205_s23  ;;  %783 = vrot.lane.b32.xlu1 %v2313_v2, %s2205_s23 }
  0x8d   : > { %v324_v4 = vpop.permute.xlu0 %323  ;;  %v322_v5 = vpop.permute.xlu1 %321 }
  0x8e   : > { %v328_v9 = vsel %vm327_vm0, %v322_v5, %v324_v4  ;;  %v1098_v5 = vld [vmem:[%s2570_s4] sm:$0xff] }
  0x91   : > { %v326_v6 = vpop.permute.xlu0 %325  ;;  %v786_v11 = vpop.permute.xlu1 %785 }
  0x92   : > { %v329_v7 = vsel %vm327_vm0, %v324_v4, %v326_v6  ;;  %v2208_v4 = vmov 0  }
  0x93   : > { %336 = vmatprep.subr.mxu0 %v329_v7  ;;  %486 = vmatprep.subr.mxu1 %v329_v7 }
  0x94   : > { %337 = vmatpush1.msra.mxu0 %v328_v9  ;;  %487 = vmatpush1.msra.mxu1 %v328_v9 }
  0x95   : > { %2023 = vmatmul.mubr.msk.f32.vlgmr.msra.gmra.mrb[0].mxu0 %vm332_vm1, %v2022_v8  ;;  %410 = vmatprep.subr.mxu0 %v2311_v1  ;;  %v788_v12 = vpop.permute.xlu0 %787  ;;  %v784_v15 = vpop.permute.xlu1 %783 }
  0x96   : > { %411 = vmatpush1.msra.mxu0 %v2313_v2  ;;  %474 = vmatprep.mubr.f32.mxu0 %v2203_v0  ;;  %v791_v13 = vsel %vm789_vm2, %v786_v11, %v788_v12  ;;  %v790_v17 = vsel %vm789_vm2, %v784_v15, %v786_v11 }
  0x97   : > { %636 = vmatprep.subr.mxu0 %v329_v7  ;;  %2026 = vmatmul.mubr.msk.f32.vlgmr.msra.gmra.mrb[0].mxu1 %vm332_vm1, %v2025_v10 }
  0x98   : > { %560 = vmatprep.subr.mxu1 %v2311_v1  ;;  %624 = vmatprep.mubr.f32.mxu1 %v2203_v0 }
  0x99   : > { %561 = vmatpush1.msra.mxu1 %v2313_v2  ;;  %2133 = vset.pattern.permute.xlu0 %v2208_v4 }
  0x9a   : > { %875 = vmatprep.subr.mxu1 %v791_v13  ;;  %2134 = vset.pattern.permute.xlu1 %v2208_v4 }
  0x9d   : > { %2024 = vmatmul.mubr.msk.f32.vlgmr.msra.gmra.mrb[0].mxu0 %vm332_vm1, %v311_v14 }
  0x9e   : > { %637 = vmatpush1.msra.mxu0 %v328_v9  ;;  %700 = vmatprep.mubr.f32.mxu0 %v2203_v0  ;;  %v1087_v9 = vld [vmem:[%s2569_s3] sm:$0xff] }
  0x9f   : > { %710 = vmatprep.subr.mxu0 %v2311_v1  ;;  %2027 = vmatmul.mubr.msk.f32.vlgmr.msra.gmra.mrb[0].mxu1 %vm332_vm1, %v2020_v16 }
  0xa0   : > { %876 = vmatpush1.msra.mxu1 %v790_v17  ;;  %939 = vmatprep.mubr.f32.mxu1 %v2203_v0 }
  0xa1   : > { %2029 = vmatmul.mubr.msk.f32.vlgmr.msra.gmra.mrb[2].mxu0 %vm332_vm1, %v2028_v18 }
  0xa2   : > { %711 = vmatpush1.msra.mxu0 %v2313_v2  ;;  %774 = vmatprep.mubr.f32.mxu0 %v2203_v0 }
  0xa3   : > { %797 = vmatprep.subr.mxu0 %v791_v13 }
  0xa7   : > { %2034 = vmatmul.mubr.msk.f32.vlgmr.msra.gmra.mrb[0].mxu1 %vm332_vm1, %v2033_v19 }
  0xa8   : > { %1212 = vmatprep.mubr.f32.mxu1 %v2203_v0 }
  0xa9   : > { %2030 = vmatmul.mubr.msk.f32.vlgmr.msra.gmra.mrb[2].mxu0 %vm332_vm1, %v2021_v20 }
  0xaa   : > { %798 = vmatpush1.msra.mxu0 %v790_v17  ;;  %861 = vmatprep.mubr.f32.mxu0 %v2203_v0 }
  0xab   : > { %953 = vmatprep.subr.mxu0 %v791_v13 }
  0xad   : > { %2032 = vmatmul.mubr.msk.f32.vlgmr.msra.gmra.mrb[0].mxu0 %vm332_vm1, %v2031_v21 }
  0xae   : > { %954 = vmatpush1.msra.mxu0 %v790_v17  ;;  %1017 = vmatprep.mubr.f32.mxu0 %v2203_v0 }
  0xb1   : > { %2036 = vmatmul.mubr.msk.f32.vlgmr.msra.gmra.mrb[2].mxu0 %vm332_vm1, %v2035_v22 }
  0xb2   : > { %1512 = vmatprep.mubr.f32.mxu0 %v2203_v0 }
 0x17a   : > { %v941_v23 = vpop.f32.mrb[0].mxu1 }
 0x17b   : > { %v943_v24 = vpop.f32.mrb[1].mxu1 }
 0x180   : > { %v863_v25 = vpop.f32.mrb[0].mxu0 }
 0x181   : > { %1026 = vrot.lane.b32.xlu0 %v863_v25, %s2206_s18  ;;  %v865_v26 = vpop.f32.mrb[1].mxu0 }
 0x182   : > { %1028 = vrot.lane.b32.xlu1 %v865_v26, %s2206_s18 }
 0x184   : > { %v1019_v27 = vpop.f32.mrb[2].mxu0 }
 0x185   : > { %1049 = vrot.lane.b32.xlu0 %v1019_v27, %s2207_s19  ;;  %v1021_v28 = vpop.f32.mrb[3].mxu0 }
 0x186   : > { %1051 = vrot.lane.b32.xlu1 %v1021_v28, %s2207_s19 }
 0x1f3   : > { %v1027_v37 = vpop.permute.xlu0 %1026 }
 0x1f4   : > { %v1029_v39 = vpop.permute.xlu1 %1028 }
 0x1f5   : > { %v1033_v40 = vsel %vm1032_vm3, %v1027_v37, %v1029_v39  ;;  %v1034_v41 = vsel %vm1032_vm3, %v1029_v39, %v1027_v37  ;;  %v1124_v39 = vld [vmem:[%s2571_s5] sm:$0xff] }
 0x1f6   : > { %v1047_v42 = vmul.f32 %v1040_v35, %v1034_v41  ;;  %v1048_v43 = vmul.f32 %v1044_v36, %v1033_v40  ;;  %v2039_v40 = vld [vmem:[%s2571_s5 + $0x10] sm:$0xff] }
 0x1f7   : > { %v1050_v46 = vpop.permute.xlu0 %1049 }
 0x1f8   : > { %v1052_v47 = vpop.permute.xlu1 %1051  ;;  %v1071_v50 = vadd.f32 %v1047_v42, %v941_v23  ;;  %v1072_v51 = vadd.f32 %v1048_v43, %v943_v24  ;;  %v2043_v42 = vld [vmem:[%s2571_s5 + $0x20] sm:$0xff] }
 0x1f9   : > { %v1054_v48 = vsel %vm1053_vm4, %v1050_v46, %v1052_v47  ;;  %v1055_v49 = vsel %vm1053_vm4, %v1052_v47, %v1050_v46  ;;  %v2053_v43 = vld [vmem:[%s2571_s5 + $0x40] sm:$0xff]  ;;  %v2051_v46 = vld [vmem:[%s2571_s5 + $0x38] sm:$0xff] }
 0x1fa   : > { %v1069_v52 = vmul.f32 %v1062_v44, %v1054_v48  ;;  %v1070_v53 = vmul.f32 %v1066_v45, %v1055_v49  ;;  %v2038_v44 = vld [vmem:[%s2571_s5 + $0x8] sm:$0xff]  ;;  %v2049_v45 = vld [vmem:[%s2571_s5 + $0x30] sm:$0xff] }
 0x1fc   : > { %v1073_v54 = vadd.f32 %v1071_v50, %v1069_v52  ;;  %v1074_v55 = vadd.f32 %v1072_v51, %v1070_v53 }
 0x1fe   : > { %v1075_v56 = vadd.f32 %v1074_v55, %v1073_v54 }
 0x200   : > { %1076 = vadd.xlane.f32.xlu0 %v1075_v56  ;;  %v2055_v56 = vld [vmem:[%s2567_s1 + $0x1] ss:$2 sm:$0x3] }
 0x28d   : > { %v1077_v57 = vpop.xlane.xlu0 %1076 }
 0x28e   : > { %v1078_v58 = vmul.f32 0.00390625, %v1077_v57 }
 0x290   : > { %v1079_v59 = vsub.f32 %v1073_v54, %v1078_v58  ;;  %v1080_v60 = vsub.f32 %v1074_v55, %v1078_v58 }
 0x292   : > { %v1081_v61 = vmul.f32 %v1079_v59, %v1079_v59  ;;  %v1082_v62 = vmul.f32 %v1080_v60, %v1080_v60 }
 0x294   : > { %v1083_v63 = vadd.f32 %v1082_v62, %v1081_v61  ;;  %v1868_v62 = vrot.slane %v2055_v56, %v2390_v32 }
 0x296   : > { %1084 = vadd.xlane.f32.xlu1 %v1083_v63  ;;  %v1872_v63 = vrot.slane %v2055_v56, %v2392_v33 }
 0x2a7   : > { %1101 = vperm.xlu1 %2134, %v1098_v5  }
 0x323   : > { %v1085_v6 = vpop.xlane.xlu1 %1084 }
 0x324   : > { %v1086_v7 = vmul.f32 0.00390625, %v1085_v6 }
 0x326   : > { %v1088_v8 = vadd.f32 1e-05, %v1086_v7 }
 0x327   : > { %v1102_v13 = vpop.permute.xlu1 %1101 }
 0x328   : > { %2135 = vrsqrt.f32 %v1088_v8 }
 0x332   : > { %v2136_v10 = vpop.eup %2135 }
 0x333   : > { %v1090_v11 = vmul.f32 %v2136_v10, %v1087_v9 }
 0x335   : > { %1093 = vperm.xlu0 %2133, %v1090_v11  }
 0x3b4   : > { %v1094_v12 = vpop.permute.xlu0 %1093 }
 0x3b5   : > { %v1096_v14 = vmul.f32 %v1094_v12, %v1079_v59  ;;  %v1097_v15 = vmul.f32 %v1094_v12, %v1080_v60 }
 0x3b7   : > { %v1104_v16 = vadd.f32 %v1102_v13, %v1096_v14  ;;  %v1105_v17 = vadd.f32 %v1102_v13, %v1097_v15 }
 0x3b9   : > { %v1106_v18 = vmax.f32 %v1104_v16, 0.0  ;;  %v1107_v19 = vmax.f32 %v1105_v17, 0.0 }
 0x3bb   : > { %1110 = vrot.lane.b32.xlu1 %v1106_v18, %s2209_s17 }
 0x3bf   : > { %1112 = vrot.lane.b32.xlu1 %v1107_v19, %s2209_s17 }
 0x42d   : > { %v1111_v20 = vpop.permute.xlu1 %1110 }
 0x42e   : > { %1119 = vst.msk [vmem:[#allocation2] sm:$0xff] %vm1118_vm7, %v1111_v20 }
 0x431   : > { %v1113_v21 = vpop.permute.xlu1 %1112 }
 0x432   : > { %v1114_v22 = vsel %vm304_vm5, %v1111_v20, %v1113_v21  ;;  %1121 = vst.msk [vmem:[#allocation2 + $0x10] sm:$0xff] %vm304_vm5, %v1113_v21 }
 0x435   : > { %v1122_v24 = vld [vmem:[#allocation2] sm:$0xff] }
 0x439   : > { %v1129_v23 = vld [vmem:[#allocation2 + $0x10] sm:$0xff] }
 0x43a   : > { %1599 = vrot.lane.b32.xlu0 %v1129_v23, %s2205_s23  ;;  %1139 = vrot.lane.b32.xlu1 %v1129_v23, %s2204_s22  ;;  %v1893_v23 = vld [vmem:[%s2572_s6] sm:$0xff] }
 0x43e   : > { %1137 = vrot.lane.b32.xlu1 %v1114_v22, %s2204_s22 }
 0x442   : > { %1135 = vrot.lane.b32.xlu1 %v1122_v24, %s2204_s22 }
 0x446   : > { %1597 = vrot.lane.b32.xlu1 %v1114_v22, %s2205_s23 }
 0x44a   : > { %1595 = vrot.lane.b32.xlu1 %v1122_v24, %s2205_s23 }
 0x4ac   : > { %v1140_v25 = vpop.permute.xlu1 %1139  ;;  %v1600_v35 = vpop.permute.xlu0 %1599 }
 0x4b0   : > { %v1138_v26 = vpop.permute.xlu1 %1137 }
 0x4b1   : > { %v1142_v27 = vsel %vm327_vm0, %v1138_v26, %v1140_v25 }
 0x4b2   : > { %1148 = vmatprep.subr.mxu1 %v1142_v27  ;;  %1448 = vmatprep.subr.mxu0 %v1142_v27 }
 0x4b4   : > { %v1136_v28 = vpop.permute.xlu1 %1135 }
 0x4b5   : > { %v1141_v30 = vsel %vm327_vm0, %v1136_v28, %v1138_v26 }
 0x4b6   : > { %1149 = vmatpush1.msra.mxu1 %v1141_v30  ;;  %1449 = vmatpush1.msra.mxu0 %v1141_v30 }
 0x4b7   : > { %2041 = vmatmul.mubr.msk.f32.vlgmr.msra.gmra.mrb[2].mxu1 %vm332_vm1, %v2040_v29  ;;  %1222 = vmatprep.subr.mxu1 %v1114_v22 }
 0x4b8   : > { %2047 = vmatmul.mubr.msk.f32.vlgmr.msra.gmra.mrb[4].mxu0 %vm332_vm1, %v2046_v34  ;;  %1522 = vmatprep.subr.mxu0 %v1114_v22  ;;  %v1598_v36 = vpop.permute.xlu1 %1597 }
 0x4b9   : > { %1223 = vmatpush1.msra.mxu1 %v1122_v24  ;;  %1523 = vmatpush1.msra.mxu0 %v1122_v24  ;;  %v1602_v37 = vsel %vm789_vm2, %v1598_v36, %v1600_v35 }
 0x4ba   : > { %1298 = vmatprep.subr.mxu1 %v1142_v27  ;;  %1764 = vmatprep.subr.mxu0 %v1602_v37 }
 0x4bb   : > { %1286 = vmatprep.mubr.f32.mxu1 %v2203_v0  ;;  %1586 = vmatprep.mubr.f32.mxu0 %v2203_v0 }
 0x4bc   : > { %v1596_v38 = vpop.permute.xlu1 %1595 }
 0x4bd   : > { %v1601_v41 = vsel %vm789_vm2, %v1596_v38, %v1598_v36 }
 0x4bf   : > { %2042 = vmatmul.mubr.msk.f32.vlgmr.msra.gmra.mrb[2].mxu1 %vm332_vm1, %v1124_v39 }
 0x4c0   : > { %1299 = vmatpush1.msra.mxu1 %v1141_v30  ;;  %2048 = vmatmul.mubr.msk.f32.vlgmr.msra.gmra.mrb[4].mxu0 %vm332_vm1, %v2039_v40 }
 0x4c1   : > { %1765 = vmatpush1.msra.mxu0 %v1601_v41  ;;  %1372 = vmatprep.subr.mxu1 %v1114_v22 }
 0x4c2   : > { %1362 = vmatprep.mubr.f32.mxu1 %v2203_v0  ;;  %1828 = vmatprep.mubr.f32.mxu0 %v2203_v0 }
 0x4c3   : > { %2044 = vmatmul.mubr.msk.f32.vlgmr.msra.gmra.mrb[4].mxu1 %vm332_vm1, %v2043_v42 }
 0x4c4   : > { %1373 = vmatpush1.msra.mxu1 %v1122_v24  ;;  %1436 = vmatprep.mubr.f32.mxu1 %v2203_v0 }
 0x4c5   : > { %1608 = vmatprep.subr.mxu1 %v1602_v37 }
 0x4c8   : > { %2054 = vmatmul.mubr.msk.f32.vlgmr.msra.gmra.mrb[4].mxu0 %vm332_vm1, %v2053_v43 }
 0x4cb   : > { %2045 = vmatmul.mubr.msk.f32.vlgmr.msra.gmra.mrb[4].mxu1 %vm332_vm1, %v2038_v44 }
 0x4cc   : > { %1609 = vmatpush1.msra.mxu1 %v1601_v41  ;;  %1672 = vmatprep.mubr.f32.mxu1 %v2203_v0 }
 0x4cd   : > { %1686 = vmatprep.subr.mxu1 %v1602_v37 }
 0x4cf   : > { %2050 = vmatmul.mubr.msk.f32.vlgmr.msra.gmra.mrb[2].mxu1 %vm332_vm1, %v2049_v45 }
 0x4d0   : > { %1687 = vmatpush1.msra.mxu1 %v1601_v41  ;;  %1750 = vmatprep.mubr.f32.mxu1 %v2203_v0  ;;  %v1843_v0 = vld [vmem:[%s2567_s1] ss:$2 sm:$0x3] }
 0x4d1   : > { %v1848_v53 = vrot.slane %v1843_v0, %v2390_v32  ;;  %v1852_v54 = vrot.slane %v1843_v0, %v2392_v33 }
 0x4d3   : > { %2052 = vmatmul.mubr.msk.f32.vlgmr.msra.gmra.mrb[4].mxu1 %vm332_vm1, %v2051_v46 }
 0x59b   : > { %v1830_v47 = vpop.f32.mrb[4].mxu0 }
 0x59c   : > { %v1832_v48 = vpop.f32.mrb[5].mxu0 }
 0x5a2   : > { %v1674_v49 = vpop.f32.mrb[2].mxu1 }
 0x5a3   : > { %1837 = vrot.lane.b32.xlu0 %v1674_v49, %s2206_s18  ;;  %v1676_v50 = vpop.f32.mrb[3].mxu1 }
 0x5a4   : > { %1839 = vrot.lane.b32.xlu1 %v1676_v50, %s2206_s18  ;;  %s2210_s18 = smov [#allocation3]  }
 0x5a6   : > { %v1752_v51 = vpop.f32.mrb[4].mxu1 }
 0x5a7   : > { %1857 = vrot.lane.b32.xlu0 %v1830_v47, %s2207_s19  ;;  %v1754_v52 = vpop.f32.mrb[5].mxu1 }
 0x5a8   : > { %1859 = vrot.lane.b32.xlu1 %v1832_v48, %s2207_s19  ;;  %s2143_s19 = sshll.u32 %s2210_s18, 4  ;;  %s2144_s19 = int_to_ptr.vmem [resolvable:$false] %s2143_s19 }
 0x5a9   : > { %s2145_s23 = scalar_lea.vmem %s2144_s19, 512  ;;  %p2146_p0 = scmp.lt.s32.totalorder %s2525_s20, %s2144_s19 }
 0x615   : > { %v1838_v55 = vpop.permute.xlu0 %1837 }
 0x616   : > { %v1840_v57 = vpop.permute.xlu1 %1839 }
 0x617   : > { %v1841_v58 = vsel %vm1032_vm3, %v1838_v55, %v1840_v57  ;;  %v1842_v59 = vsel %vm1032_vm3, %v1840_v57, %v1838_v55 }
 0x618   : > { %v1855_v60 = vmul.f32 %v1848_v53, %v1842_v59  ;;  %v1856_v61 = vmul.f32 %v1852_v54, %v1841_v58 }
 0x619   : > { %v1858_v4 = vpop.permute.xlu0 %1857 }
 0x61a   : > { %v1860_v5 = vpop.permute.xlu1 %1859  ;;  %v1877_v8 = vadd.f32 %v1855_v60, %v1752_v51  ;;  %v1878_v9 = vadd.f32 %v1856_v61, %v1754_v52 }
 0x61b   : > { %v1861_v6 = vsel %vm1053_vm4, %v1858_v4, %v1860_v5  ;;  %v1862_v7 = vsel %vm1053_vm4, %v1860_v5, %v1858_v4 }
 0x61c   : > { %v1875_v10 = vmul.f32 %v1868_v62, %v1861_v6  ;;  %v1876_v11 = vmul.f32 %v1872_v63, %v1862_v7 }
 0x61e   : > { %v1879_v12 = vadd.f32 %v1877_v8, %v1875_v10  ;;  %v1880_v13 = vadd.f32 %v1878_v9, %v1876_v11 }
 0x620   : > { %v1881_v14 = vadd.f32 %v1880_v13, %v1879_v12 }
 0x622   : > { %1882 = vadd.xlane.f32.xlu0 %v1881_v14 }
 0x6af   : > { %v1883_v15 = vpop.xlane.xlu0 %1882 }
 0x6b0   : > { %v1884_v32 = vmul.f32 0.00390625, %v1883_v15 }
 0x6b2   : > { %v1885_v16 = vsub.f32 %v1879_v12, %v1884_v32  ;;  %v1886_v33 = vsub.f32 %v1880_v13, %v1884_v32 }
 0x6b4   : > { %v1887_v17 = vmul.f32 %v1885_v16, %v1885_v16  ;;  %v1888_v18 = vmul.f32 %v1886_v33, %v1886_v33 }
 0x6b6   : > { %v1889_v19 = vadd.f32 %v1888_v18, %v1887_v17 }
 0x6b8   : > { %1890 = vadd.xlane.f32.xlu1 %v1889_v19 }
 0x6c9   : > { %1907 = vperm.xlu1 %2134, %v1904_v31  }
 0x745   : > { %v1891_v20 = vpop.xlane.xlu1 %1890 }
 0x746   : > { %v1892_v21 = vmul.f32 0.00390625, %v1891_v20 }
 0x748   : > { %v1894_v22 = vadd.f32 1e-05, %v1892_v21 }
 0x749   : > { %v1908_v29 = vpop.permute.xlu1 %1907 }
 0x74a   : > { %2137 = vrsqrt.f32 %v1894_v22 }
 0x754   : > { %v2138_v24 = vpop.eup %2137 }
 0x755   : > { %v1896_v25 = vmul.f32 %v2138_v24, %v1893_v23 }
 0x757   : > { %1899 = vperm.xlu0 %2133, %v1896_v25  }
 0x7d6   : > { %v1900_v26 = vpop.permute.xlu0 %1899 }
 0x7d7   : > { %v1902_v27 = vmul.f32 %v1900_v26, %v1885_v16  ;;  %v1903_v28 = vmul.f32 %v1900_v26, %v1886_v33 }
 0x7d9   : > { %v1910_v30 = vadd.f32 %v1908_v29, %v1902_v27  ;;  %v1911_v34 = vadd.f32 %v1908_v29, %v1903_v28 }
 0x7db   : > { %1916 = vrot.lane.b32.xlu1 %v1911_v34, %s2209_s17  ;;  %1914 = vrot.lane.b32.xlu0 %v1910_v30, %s2209_s17  ;;  %s2061_s17 = sshll.u32 %s2277_s9, 8  ;;  %s1941_s9 = scalar_lea.sflag [#allocation4], %s296_s10 }
 0x7dc   : > { %s2523_s25 = scalar_lea.hbm %s2574_s8, %s2061_s17 }
 0x84d   : > { %v1917_v35 = vpop.permute.xlu1 %1916  ;;  %v1915_v36 = vpop.permute.xlu0 %1914 }
 0x84e   : > { %v1918_v37 = vsel %vm304_vm5, %v1915_v36, %v1917_v35  ;;  %v1922_v38 = vadd.f32 %v1915_v36, %v2313_v2  ;;  %v1924_v40 = vadd.f32 %v1917_v35, %v2319_v3 }
 0x84f   : > { %v1923_v39 = vadd.f32 %v1918_v37, %v2311_v1 }
 0x850   : > { %1928 = vrot.lane.b32.xlu0 %v1922_v38, %s2204_s22 }
 0x851   : > { %1930 = vrot.lane.b32.xlu1 %v1923_v39, %s2204_s22 }
 0x854   : > { %1932 = vrot.lane.b32.xlu0 %v1924_v40, %s2204_s22  ;;  %s2139_s22 = scalar_lea.vmem %s2525_s20, 256 }
 0x855   : > { %p2140_p11 = scmp.ne.s32.totalorder %s2525_s20, %s2139_s22  ;;  %p2147_p1 = scmp.lt.s32.totalorder %s2145_s23, %s2139_s22 }
 0x857   : > { %p2141_p12 = pnand %p2140_p11, %p2294_p5  ;;  %p2148_p2 = por %p2147_p1, %p2146_p0 }
 0x859   : > { %p2142_p13 = pneg %p2141_p12 }
 0x85b   : > { %p2149_p3 = pnand %p2148_p2, %p2142_p13 }
 0x8c2   : > { %v1929_v41 = vpop.permute.xlu0 %1928 }
 0x8c3   : > { %v1931_v42 = vpop.permute.xlu1 %1930 }
 0x8c4   : > { %v1934_v2 = vsel %vm327_vm0, %v1929_v41, %v1931_v42 }
 0x8c5   : > { %1938 = vst [vmem:[%s298_s13] sm:$0xff] %v1934_v2 }
 0x8c6   : > { %v1933_v1 = vpop.permute.xlu0 %1932 }
 0x8c7   : > { %v1935_v3 = vsel %vm327_vm0, %v1931_v42, %v1933_v1 }
 0x8c8   : > { %1939 = vst [vmem:[%s298_s13 + $0x8] sm:$0xff] %v1935_v3 }
 0x8c9   : > { %2152 = shalt.err (!%p2149_p3)
}
 0x8ca   : > { %s2153_s26 = scalar_lea.hbm %s2523_s25, 256  ;;  %s2157_s17 = scalar_lea.hbm %s2574_s8, 512 }
 0x8cb   : > { %p2154_p4 = scmp.ne.s32.totalorder %s2523_s25, %s2153_s26  ;;  %p2158_p9 = scmp.lt.u32.totalorder %s2523_s25, %s2574_s8 }
 0x8cc   : > { %p2159_p10 = scmp.lt.u32.totalorder %s2157_s17, %s2153_s26  ;;  %p2161_p12 = scmp.lt.u32.totalorder %s2153_s26, %s2523_s25 }
 0x8cd   : > { %p2155_p7 = pnand %p2154_p4, %p2294_p5 }
 0x8ce   : > { %p2160_p11 = por %p2159_p10, %p2158_p9 }
 0x8cf   : > { %p2156_p8 = pneg %p2155_p7 }
 0x8d0   : > { %p2162_p13 = por %p2161_p12, %p2160_p11 }
 0x8d2   : > { %p2163_p0 = pnand %p2162_p13, %p2156_p8 }
 0x8d4   : > { %2166 = shalt.err (!%p2163_p0)
}
 0x8d5   : > { %2087 = dma.vmem_to_hbm [thread:$0]  (%p2294_p5), %s2525_s20, 256, %s2523_s25, %s1941_s9  }
 0x8d6 PF: > { %p2093_p1 = scmp.ge.s32.totalorder %s2201_s30, 2  ;;  %s1967_s24 = sand.u32 1, %s2189_s27  }
 0x8d7   : > { %s1968_s22 = scalar_lea.sflag [#allocation4], %s1967_s24 }
 0x8d8   : > { %p2090_p2 = pnand %p2093_p1, %p2298_p6 }
 0x8da   : > { %2184 = dma.done.wait (!%p2090_p2), %s1968_s22, 256  }
 0x8db   : > { %2186 = vsyncadd (!%p2090_p2), %s1968_s22, 4294967040  ;;  %p18_p3 = scmp.ge.s32.totalorder %s2281_s11, 4   ;;  %s2577_s27 = smov %s2193_s28 }
 0x8dc   : > { %s2578_s28 = smov %s2197_s29  ;;  %s2579_s29 = smov %s2292_s14 }
 0x8dd   : > { %s2580_s30 = smov %s2281_s11  ;;  %20 = sbr.rel (!%p18_p3) target bundleno = 3 (0x3), region = 104 }
 0x8e4   :  { %1973 = vsyncpa [#allocation4], 1 }
 0x8e5   :  { %1975 = vsyncpa [#allocation4 + $0x1], 1 }

</bundles_post_ra>
